<compile_context>
chip_gen: v5e
topology: v5e:2x2
jax: 0.10.0
libtpu: 0.0.40
codegen_flags: <defaults>
</compile_context>

<pallas_src>
import jax
import jax.numpy as jnp
from jax.experimental import pallas as pl
from jax.experimental.pallas import tpu as pltpu

LANE = 128


def _round_up(n, m):
    return ((n + m - 1) // m) * m


def _pad2d(a, rows, cols):
    return jnp.pad(a, ((0, rows - a.shape[0]), (0, cols - a.shape[1])))


def mlp_kernel(x_ref,
               w1_ref, b1_ref,
               w2_ref, b2_ref,
               w3_ref, b3_ref,
               w4_ref, b4_ref,
               out_ref):
    # All four matmuls run on the MXU with bf16 operands and f32 accumulation.
    h = jnp.dot(x_ref[...], w1_ref[...], preferred_element_type=jnp.float32)
    h = jnp.maximum(h + b1_ref[...], 0.0).astype(jnp.bfloat16)      # fc1 + ReLU
    h = jnp.dot(h, w2_ref[...], preferred_element_type=jnp.float32)
    h = jnp.maximum(h + b2_ref[...], 0.0).astype(jnp.bfloat16)      # fc2 + ReLU
    h = jnp.dot(h, w3_ref[...], preferred_element_type=jnp.float32)
    h = jnp.maximum(h + b3_ref[...], 0.0).astype(jnp.bfloat16)      # fc3 + ReLU
    h = jnp.dot(h, w4_ref[...], preferred_element_type=jnp.float32) + b4_ref[...]
    out_ref[...] = h.astype(out_ref.dtype)                           # fc4 logits


def _pad_and_cast_params(params):
    """Zero-pad every feature dim up to a multiple of 128 lanes.

    Weights -> bf16 (MXU operands), biases -> f32 (added post-accumulation).
    Zero padding keeps the math exact: padded hidden units are relu(0)=0 and
    multiply zero weight rows in the next layer.
    """
    padded = {}
    for idx in range(1, 5):
        w = params[f"w{idx}"]
        b = params[f"b{idx}"]
        kin = _round_up(w.shape[0], LANE)
        kout = _round_up(w.shape[1], LANE)
        padded[f"w{idx}"] = _pad2d(w, kin, kout).astype(jnp.bfloat16)
        padded[f"b{idx}"] = _pad2d(b, 1, kout).astype(jnp.float32)
    return padded


def net_forward(x, params, *, block_b=128):
    """x: (B, input_size) float32. params: dict of (in,out) weights and (1,out) biases."""
    B, d_in = x.shape
    num_class = params["w4"].shape[1]

    p = _pad_and_cast_params(params)
    d_in_p = p["w1"].shape[0]
    h1 = p["w1"].shape[1]
    h2 = p["w2"].shape[1]
    h3 = p["w3"].shape[1]
    out_p = p["w4"].shape[1]

    # Batch tiling: keep the tile a multiple of 8 sublanes; pad the batch so it
    # divides evenly (pad rows are sliced off at the end).
    block_b = max(8, min(block_b, _round_up(B, 8)))
    Bp = _round_up(B, block_b)
    x = _pad2d(x, Bp, d_in_p).astype(jnp.bfloat16)

    grid = (Bp // block_b,)

    def full(i):
        return (0, 0)

    in_specs = [
        pl.BlockSpec((block_b, d_in_p), lambda i: (i, 0)),   # x: tiled over batch
        pl.BlockSpec(p["w1"].shape, full),
        pl.BlockSpec(p["b1"].shape, full),
        pl.BlockSpec(p["w2"].shape, full),
        pl.BlockSpec(p["b2"].shape, full),
        pl.BlockSpec(p["w3"].shape, full),
        pl.BlockSpec(p["b3"].shape, full),
        pl.BlockSpec(p["w4"].shape, full),
        pl.BlockSpec(p["b4"].shape, full),
    ]
    # Lane-dense (128-wide) output block -> unmasked stores; pad sliced off below.
    out_specs = pl.BlockSpec((block_b, out_p), lambda i: (i, 0))

    flops = 2 * Bp * (d_in_p * h1 + h1 * h2 + h2 * h3 + h3 * out_p)
    bytes_accessed = (
        x.size * 2
        + sum(p[f"w{i}"].size * 2 + p[f"b{i}"].size * 4 for i in range(1, 5))
        + Bp * out_p * 4
    )

    out = pl.pallas_call(
        mlp_kernel,
        out_shape=jax.ShapeDtypeStruct((Bp, out_p), jnp.float32),
        grid_spec=pltpu.PrefetchScalarGridSpec(
            num_scalar_prefetch=0,
            grid=grid,
            in_specs=in_specs,
            out_specs=out_specs,
        ),
        compiler_params=pltpu.CompilerParams(
            dimension_semantics=("parallel",),
        ),
        cost_estimate=pl.CostEstimate(
            flops=flops, transcendentals=0, bytes_accessed=bytes_accessed),
    )(x,
      p["w1"], p["b1"],
      p["w2"], p["b2"],
      p["w3"], p["b3"],
      p["w4"], p["b4"])

    # Strip batch / lane padding back to the logical logits.
    return out[:B, :num_class]


def init_params(key, input_size, num_class):
    dims = [(input_size, 512), (512, 124), (124, 64), (64, num_class)]
    params = {}
    for idx, (fan_in, fan_out) in enumerate(dims, start=1):
        key, kw, kb = jax.random.split(key, 3)
        bound = 1.0 / jnp.sqrt(fan_in)  # PyTorch nn.Linear default init scale
        params[f"w{idx}"] = jax.random.uniform(
            kw, (fan_in, fan_out), jnp.float32, -bound, bound)
        params[f"b{idx}"] = jax.random.uniform(
            kb, (1, fan_out), jnp.float32, -bound, bound)
    return params


def reference_forward(x, p):
    """Pure-JAX reference with the same bf16-operand / f32-accumulate numerics."""
    def lin(h, w, b):
        return jnp.dot(h.astype(jnp.bfloat16), w.astype(jnp.bfloat16),
                       preferred_element_type=jnp.float32) + b
    h = jnp.maximum(lin(x, p["w1"], p["b1"]), 0.0)
    h = jnp.maximum(lin(h, p["w2"], p["b2"]), 0.0)
    h = jnp.maximum(lin(h, p["w3"], p["b3"]), 0.0)
    return lin(h, p["w4"], p["b4"])


if __name__ == "__main__":
    INPUT_SIZE = 256   # small "flattened image" feature size
    NUM_CLASS = 10
    BATCH = 256        # 2 x 128-row tiles -> both v7x TensorCores get a block

    key = jax.random.PRNGKey(0)
    key, kx = jax.random.split(key)
    x = jax.random.normal(kx, (BATCH, INPUT_SIZE), jnp.float32)
    params = init_params(key, INPUT_SIZE, NUM_CLASS)

    out = net_forward(x, params, block_b=128)
    out = jax.block_until_ready(out)

    ref = reference_forward(x, params)
    assert out.shape == (BATCH, NUM_CLASS)
    assert jnp.allclose(out, ref, atol=2e-2, rtol=2e-2), "mismatch vs. JAX reference"
    print("KERNEL_OK")
</pallas_src>

<mosaic_0001>
module attributes {stable_mosaic.version = 11 : i64} {
  func.func @mlp_kernel(%arg0: i32, %arg1: memref<128x256xbf16, #tpu.memory_space<vmem>>, %arg2: memref<256x512xbf16, #tpu.memory_space<vmem>>, %arg3: memref<1x512xf32, #tpu.memory_space<vmem>>, %arg4: memref<512x128xbf16, #tpu.memory_space<vmem>>, %arg5: memref<1x128xf32, #tpu.memory_space<vmem>>, %arg6: memref<128x128xbf16, #tpu.memory_space<vmem>>, %arg7: memref<1x128xf32, #tpu.memory_space<vmem>>, %arg8: memref<128x128xbf16, #tpu.memory_space<vmem>>, %arg9: memref<1x128xf32, #tpu.memory_space<vmem>>, %arg10: memref<128x128xf32, #tpu.memory_space<vmem>>) attributes {dimension_semantics = [#tpu.dimension_semantics<parallel>], iteration_bounds = array<i64: 2>, scalar_prefetch = 0 : i64, scratch_operands = 0 : i64, tpu.core_type = #tpu.core_type<tc>, window_params = [{transform_indices = @transform_0, window_bounds = array<i64: 128, 256>}, {pipeline_mode = #tpu.pipeline_mode<synchronous>, transform_indices = @transform_1, window_bounds = array<i64: 256, 512>}, {pipeline_mode = #tpu.pipeline_mode<synchronous>, transform_indices = @transform_2, window_bounds = array<i64: 1, 512>}, {pipeline_mode = #tpu.pipeline_mode<synchronous>, transform_indices = @transform_3, window_bounds = array<i64: 512, 128>}, {pipeline_mode = #tpu.pipeline_mode<synchronous>, transform_indices = @transform_4, window_bounds = array<i64: 1, 128>}, {pipeline_mode = #tpu.pipeline_mode<synchronous>, transform_indices = @transform_5, window_bounds = array<i64: 128, 128>}, {pipeline_mode = #tpu.pipeline_mode<synchronous>, transform_indices = @transform_6, window_bounds = array<i64: 1, 128>}, {pipeline_mode = #tpu.pipeline_mode<synchronous>, transform_indices = @transform_7, window_bounds = array<i64: 128, 128>}, {pipeline_mode = #tpu.pipeline_mode<synchronous>, transform_indices = @transform_8, window_bounds = array<i64: 1, 128>}, {transform_indices = @transform_9, window_bounds = array<i64: 128, 128>}]} {
    %c0 = arith.constant 0 : index
    %c0_0 = arith.constant 0 : index
    %0 = vector.load %arg1[%c0, %c0_0] : memref<128x256xbf16, #tpu.memory_space<vmem>>, vector<128x256xbf16>
    %c0_1 = arith.constant 0 : index
    %c0_2 = arith.constant 0 : index
    %1 = vector.load %arg2[%c0_1, %c0_2] : memref<256x512xbf16, #tpu.memory_space<vmem>>, vector<256x512xbf16>
    %cst = arith.constant dense<0.000000e+00> : vector<128x512xf32>
    %2 = tpu.matmul %0, %1, %cst {dimension_numbers = #tpu.dot_dimension_numbers<[1], [0], [0], [1], [0, 0, 1, 1], [], []>} : vector<128x256xbf16>, vector<256x512xbf16>, vector<128x512xf32> -> vector<128x512xf32>
    %c0_3 = arith.constant 0 : index
    %c0_4 = arith.constant 0 : index
    %3 = vector.load %arg3[%c0_3, %c0_4] : memref<1x512xf32, #tpu.memory_space<vmem>>, vector<1x512xf32>
    %4 = vector.broadcast %3 : vector<1x512xf32> to vector<128x512xf32>
    %5 = arith.addf %2, %4 : vector<128x512xf32>
    %cst_5 = arith.constant 0.000000e+00 : f32
    %6 = vector.broadcast %cst_5 : f32 to vector<128x512xf32>
    %7 = arith.maximumf %5, %6 : vector<128x512xf32>
    %8 = arith.truncf %7 : vector<128x512xf32> to vector<128x512xbf16>
    %c0_6 = arith.constant 0 : index
    %c0_7 = arith.constant 0 : index
    %9 = vector.load %arg4[%c0_6, %c0_7] : memref<512x128xbf16, #tpu.memory_space<vmem>>, vector<512x128xbf16>
    %cst_8 = arith.constant dense<0.000000e+00> : vector<128x128xf32>
    %10 = tpu.matmul %8, %9, %cst_8 {dimension_numbers = #tpu.dot_dimension_numbers<[1], [0], [0], [1], [0, 0, 1, 1], [], []>} : vector<128x512xbf16>, vector<512x128xbf16>, vector<128x128xf32> -> vector<128x128xf32>
    %c0_9 = arith.constant 0 : index
    %c0_10 = arith.constant 0 : index
    %11 = vector.load %arg5[%c0_9, %c0_10] : memref<1x128xf32, #tpu.memory_space<vmem>>, vector<1x128xf32>
    %12 = vector.broadcast %11 : vector<1x128xf32> to vector<128x128xf32>
    %13 = arith.addf %10, %12 : vector<128x128xf32>
    %cst_11 = arith.constant 0.000000e+00 : f32
    %14 = vector.broadcast %cst_11 : f32 to vector<128x128xf32>
    %15 = arith.maximumf %13, %14 : vector<128x128xf32>
    %16 = arith.truncf %15 : vector<128x128xf32> to vector<128x128xbf16>
    %c0_12 = arith.constant 0 : index
    %c0_13 = arith.constant 0 : index
    %17 = vector.load %arg6[%c0_12, %c0_13] : memref<128x128xbf16, #tpu.memory_space<vmem>>, vector<128x128xbf16>
    %cst_14 = arith.constant dense<0.000000e+00> : vector<128x128xf32>
    %18 = tpu.matmul %16, %17, %cst_14 {dimension_numbers = #tpu.dot_dimension_numbers<[1], [0], [0], [1], [0, 0, 1, 1], [], []>} : vector<128x128xbf16>, vector<128x128xbf16>, vector<128x128xf32> -> vector<128x128xf32>
    %c0_15 = arith.constant 0 : index
    %c0_16 = arith.constant 0 : index
    %19 = vector.load %arg7[%c0_15, %c0_16] : memref<1x128xf32, #tpu.memory_space<vmem>>, vector<1x128xf32>
    %20 = vector.broadcast %19 : vector<1x128xf32> to vector<128x128xf32>
    %21 = arith.addf %18, %20 : vector<128x128xf32>
    %cst_17 = arith.constant 0.000000e+00 : f32
    %22 = vector.broadcast %cst_17 : f32 to vector<128x128xf32>
    %23 = arith.maximumf %21, %22 : vector<128x128xf32>
    %24 = arith.truncf %23 : vector<128x128xf32> to vector<128x128xbf16>
    %c0_18 = arith.constant 0 : index
    %c0_19 = arith.constant 0 : index
    %25 = vector.load %arg8[%c0_18, %c0_19] : memref<128x128xbf16, #tpu.memory_space<vmem>>, vector<128x128xbf16>
    %cst_20 = arith.constant dense<0.000000e+00> : vector<128x128xf32>
    %26 = tpu.matmul %24, %25, %cst_20 {dimension_numbers = #tpu.dot_dimension_numbers<[1], [0], [0], [1], [0, 0, 1, 1], [], []>} : vector<128x128xbf16>, vector<128x128xbf16>, vector<128x128xf32> -> vector<128x128xf32>
    %c0_21 = arith.constant 0 : index
    %c0_22 = arith.constant 0 : index
    %27 = vector.load %arg9[%c0_21, %c0_22] : memref<1x128xf32, #tpu.memory_space<vmem>>, vector<1x128xf32>
    %28 = vector.broadcast %27 : vector<1x128xf32> to vector<128x128xf32>
    %29 = arith.addf %26, %28 : vector<128x128xf32>
    %c0_23 = arith.constant 0 : index
    %c0_24 = arith.constant 0 : index
    %30 = vector.load %arg10[%c0_23, %c0_24] : memref<128x128xf32, #tpu.memory_space<vmem>>, vector<128x128xf32>
    tpu.vector_store %arg10[%c0_23, %c0_24], %29 {strides = array<i32>} : memref<128x128xf32, #tpu.memory_space<vmem>>, vector<128x128xf32>,
    return
  }
  func.func @transform_0(%arg0: i32) -> (i32, i32) {
    %c0_i32 = arith.constant 0 : i32
    %c0_i32_0 = arith.constant 0 : i32
    return %arg0, %c0_i32 : i32, i32
  }
  func.func @transform_1(%arg0: i32) -> (i32, i32) {
    %c0_i32 = arith.constant 0 : i32
    %c0_i32_0 = arith.constant 0 : i32
    %c0_i32_1 = arith.constant 0 : i32
    return %c0_i32, %c0_i32_0 : i32, i32
  }
  func.func @transform_2(%arg0: i32) -> (i32, i32) {
    %c0_i32 = arith.constant 0 : i32
    %c0_i32_0 = arith.constant 0 : i32
    %c0_i32_1 = arith.constant 0 : i32
    return %c0_i32, %c0_i32_0 : i32, i32
  }
  func.func @transform_3(%arg0: i32) -> (i32, i32) {
    %c0_i32 = arith.constant 0 : i32
    %c0_i32_0 = arith.constant 0 : i32
    %c0_i32_1 = arith.constant 0 : i32
    return %c0_i32, %c0_i32_0 : i32, i32
  }
  func.func @transform_4(%arg0: i32) -> (i32, i32) {
    %c0_i32 = arith.constant 0 : i32
    %c0_i32_0 = arith.constant 0 : i32
    %c0_i32_1 = arith.constant 0 : i32
    return %c0_i32, %c0_i32_0 : i32, i32
  }
  func.func @transform_5(%arg0: i32) -> (i32, i32) {
    %c0_i32 = arith.constant 0 : i32
    %c0_i32_0 = arith.constant 0 : i32
    %c0_i32_1 = arith.constant 0 : i32
    return %c0_i32, %c0_i32_0 : i32, i32
  }
  func.func @transform_6(%arg0: i32) -> (i32, i32) {
    %c0_i32 = arith.constant 0 : i32
    %c0_i32_0 = arith.constant 0 : i32
    %c0_i32_1 = arith.constant 0 : i32
    return %c0_i32, %c0_i32_0 : i32, i32
  }
  func.func @transform_7(%arg0: i32) -> (i32, i32) {
    %c0_i32 = arith.constant 0 : i32
    %c0_i32_0 = arith.constant 0 : i32
    %c0_i32_1 = arith.constant 0 : i32
    return %c0_i32, %c0_i32_0 : i32, i32
  }
  func.func @transform_8(%arg0: i32) -> (i32, i32) {
    %c0_i32 = arith.constant 0 : i32
    %c0_i32_0 = arith.constant 0 : i32
    %c0_i32_1 = arith.constant 0 : i32
    return %c0_i32, %c0_i32_0 : i32, i32
  }
  func.func @transform_9(%arg0: i32) -> (i32, i32) {
    %c0_i32 = arith.constant 0 : i32
    %c0_i32_0 = arith.constant 0 : i32
    return %arg0, %c0_i32 : i32, i32
  }
}

</mosaic_0001>

<bundles_post_ra>
// kernel: tpu_custom_call.1
= control target key start
LH: loop header
LB: loop body
LE: loop exit
PB: predicated region body
PF: predicated region fallthrough
CT: control target
= control target key end

     0   :  { %s3906_s0 = inlined_call_operand.hbm [shape: bf16[256,256], index: 0, kind: input, shape index: {}]   ;;  %s3907_s1 = inlined_call_operand.hbm [shape: bf16[256,512], index: 1, kind: input, shape index: {}]   ;;  %s3908_s2 = inlined_call_operand.hbm [shape: f32[1,512], index: 2, kind: input, shape index: {}]   ;;  %s3909_s3 = inlined_call_operand.hbm [shape: bf16[512,128], index: 3, kind: input, shape index: {}]   ;;  %s3910_s4 = inlined_call_operand.vmem [shape: f32[1,128], index: 4, kind: input, shape index: {}]   ;;  %s3911_s5 = inlined_call_operand.hbm [shape: bf16[128,128], index: 5, kind: input, shape index: {}]   ;;  %s3912_s6 = inlined_call_operand.vmem [shape: f32[1,128], index: 6, kind: input, shape index: {}]   ;;  %s3913_s7 = inlined_call_operand.hbm [shape: bf16[128,128], index: 7, kind: input, shape index: {}]   ;;  %s3914_s8 = inlined_call_operand.vmem [shape: f32[1,128], index: 8, kind: input, shape index: {}]   ;;  %s3915_s9 = inlined_call_operand.hbm [shape: f32[256,128], index: 9, kind: output, shape index: {}]  }
   0x1   :  { %3916 = sst [smem:[#allocation19_spill]] %s3907_s1 }
   0x2   :  { %3917 = sst [smem:[#allocation20_spill]] %s3908_s2 }
   0x3   :  { %3918 = sst [smem:[#allocation21_spill]] %s3909_s3 }
   0x4   :  { %3919 = sst [smem:[#allocation22_spill]] %s3911_s5 }
   0x5   :  { %14 = vsyncpa [#allocation3], 0 }
   0x6   :  { %16 = vsyncpa [#allocation3 + $0x1], 0 }
   0x7   :  { %17 = vsyncpa [#allocation6], 0 }
   0x8   :  { %18 = vsyncpa [#allocation9], 0 }
   0x9   :  { %19 = vsyncpa [#allocation12], 0 }
   0xa   :  { %20 = vsyncpa [#allocation4], 0 }
   0xb   :  { %22 = vsyncpa [#allocation4 + $0x1], 0  ;;  %s3421_s30 = smov 0   ;;  %s3423_s10 = smov 0  }
   0xc   :  { %s3425_s11 = smov 0   ;;  %s3427_s12 = smov 0  }
   0xd LB: > { %s3920_s1 = sld [smem:[#allocation19_spill]]  ;;  %s3445_s16 = sadd.s32 4294967295, %s3356_s12   ;;  %s3356_s12 = sphi %s3427_s12, %s3935_s12   ;;  %s3352_s11 = sphi %s3425_s11, %s3934_s11   ;;  %s3348_s10 = sphi %s3423_s10, %s3933_s10   ;;  %s3344_s30 = sphi %s3421_s30, %s3932_s30  }
   0xe   : > { %p2307_p0 = scmp.ge.s32.totalorder %s3356_s12, 1  ;;  %p49_p1 = scmp.eq.s32.totalorder %s3445_s16, 0 }
   0xf   : > { %p253_p2 = scmp.lt.s32.totalorder %s3356_s12, 3  ;;  %s3358_s18 = smov [#allocation5]  }
  0x10   : > { %s266_s19 = sshll.u32 %s3358_s18, 4  ;;  %s3922_s3 = sld [smem:[#allocation21_spill]]  ;;  %s267_s19 = int_to_ptr.vmem [resolvable:$true] %s266_s19 }
  0x11   : > { %p3450_p3 = pnand %p2307_p0, %p253_p2  ;;  %s3359_s24 = smov [#allocation8]  }
  0x12   : > { %s292_s25 = sshll.u32 %s3359_s24, 4  ;;  %s3360_s26 = smov 256   ;;  %s293_s25 = int_to_ptr.vmem [resolvable:$true] %s292_s25 }
  0x13   : > { %s264_s15 = sshll.u32 %s3920_s1, 4  ;;  %p3014_p4 = pneg %p3450_p3  ;;  %s265_s15 = int_to_ptr.hbm [resolvable:$true] %s264_s15 }
  0x14   : > { %s3361_s27 = smov 16   ;;  %s3362_s28 = smov 64  }
  0x15   : > { %p3462_p6 = pnand %p3014_p4, %p49_p1  ;;  %s3363_s29 = smov 4  }
  0x16   : > { %s290_s22 = sshll.u32 %s3922_s3, 4  ;;  %s3924_s2 = sld [smem:[#allocation20_spill]]  ;;  %s291_s22 = int_to_ptr.hbm [resolvable:$true] %s290_s22 }
  0x17   : > { %3017 = dma.hbm_to_vmem [thread:$0]  (!%p3462_p6), %s265_s15, 8192, %s267_s19, [#allocation6], %s3360_s26, %s3360_s26, %s3361_s27  }
  0x18   : > { %3023 = dma.hbm_to_vmem [thread:$0]  (!%p3462_p6), %s291_s22, 4096, %s293_s25, [#allocation9], %s3362_s28, %s3362_s28, %s3363_s29  }
  0x19   : > { %s3364_s20 = smov [#allocation7]   ;;  %s3925_s5 = sld [smem:[#allocation22_spill]] }
  0x1a   : > { %s281_s21 = sshll.u32 %s3364_s20, 4  ;;  %s3365_s19 = smov [#allocation10]   ;;  %s282_s21 = int_to_ptr.vmem [resolvable:$true] %s281_s21 }
  0x1b   : > { %s309_s22 = sshll.u32 %s3365_s19, 4  ;;  %s324_s27 = sshll.u32 %s3913_s7, 4  ;;  %s310_s22 = int_to_ptr.vmem [resolvable:$true] %s309_s22  ;;  %s325_s27 = int_to_ptr.hbm [resolvable:$true] %s324_s27 }
  0x1c   : > { %s279_s18 = sshll.u32 %s3924_s2, 4  ;;  %s3366_s1 = smov [#allocation11]   ;;  %s280_s18 = int_to_ptr.hbm [resolvable:$true] %s279_s18 }
  0x1d   : > { %3020 = dma.hbm_to_vmem [thread:$0]  (!%p3462_p6), %s280_s18, 64, %s282_s21, [#allocation6]  }
  0x1e   : > { %s326_s13 = sshll.u32 %s3366_s1, 4  ;;  %s2306_s14 = sadd.s32 4294967294, %s3356_s12   ;;  %s327_s13 = int_to_ptr.vmem [resolvable:$true] %s326_s13 }
  0x1f   : > { %s307_s15 = sshll.u32 %s3925_s5, 4  ;;  %s3487_s18 = sadd.s32 1, %s3356_s12   ;;  %s308_s15 = int_to_ptr.hbm [resolvable:$true] %s307_s15 }
  0x20   : > { %3026 = dma.hbm_to_vmem [thread:$0]  (!%p3462_p6), %s308_s15, 1024, %s310_s22, [#allocation9], %s3362_s28, %s3362_s28, %s3363_s29  }
  0x21   : > { %3029 = dma.hbm_to_vmem [thread:$0]  (!%p3462_p6), %s325_s27, 1024, %s327_s13, [#allocation12], %s3362_s28, %s3362_s28, %s3363_s29  }
  0x22   : > { %s35_s20 = sadd.s32 1, %s3352_s11  ;;  %s32_s21 = ssub.s32 %s3356_s12, %s3487_s18 }
  0x23   : > { %p42_p7 = scmp.ne.s32.totalorder %s3352_s11, %s3348_s10  ;;  %p33_p8 = scmp.eq.s32.totalorder %s32_s21, 0 }
  0x24   : > { %p43_p9 = scmp.eq.s32.totalorder %s3356_s12, 0  ;;  %p48_p10 = scmp.ne.s32.totalorder %s3348_s10, %s3344_s30 }
  0x25   : > { %p240_p11 = scmp.eq.s32.totalorder %s3445_s16, 1  ;;  %p246_p2 = scmp.eq.s32.totalorder %s2306_s14, 1 }
  0x26   : > { %s3499_s24 = scalar_select %p33_p8, %s3352_s11, %s35_s20  }
  0x27   : > { %p3501_p12 = por %p43_p9, %p42_p7  ;;  %p3507_p13 = por %p49_p1, %p48_p10 }
  0x28   : > { %p3511_p0 = por %p240_p11, %p42_p7  ;;  %p3043_p4 = scmp.lt.s32.totalorder %s3356_s12, 2 }
  0x29   : > { %s343_s29 = sand.u32 1, %s3352_s11   ;;  %p3517_p6 = por %p246_p2, %p48_p10 }
  0x2a   : > { %s2314_s22 = sshll.u32 %s343_s29, 7  ;;  %s2844_s25 = sshll.u32 %s3356_s12, 7 }
  0x2b   : > { %s353_s1 = scalar_lea.hbm %s3906_s0, %s2844_s25  ;;  %s347_s20 = scalar_lea.vmem [#allocation2], %s2314_s22 }
  0x2c   : > { %s354_s13 = sshll.u32 %s353_s1, 4  ;;  %s356_s21 = sshll.u32 %s347_s20, 4  ;;  %s355_s13 = int_to_ptr.hbm [resolvable:$true] %s354_s13  ;;  %s357_s21 = int_to_ptr.vmem [resolvable:$true] %s356_s21 }
  0x2d   : > { %p3527_p7 = pnand %p3043_p4, %p3501_p12  ;;  %s344_s2 = scalar_lea.sflag [#allocation3], %s343_s29 }
  0x2e   : > { %s3248_s3 = sshra.s32 %s355_s13, 4  ;;  %s3255_s26 = scalar_lea.hbm %s3906_s0, 256  ;;  %s3249_s3 = int_to_ptr.hbm [resolvable:$true] %s3248_s3 }
  0x2f   : > { %s3250_s5 = scalar_lea.hbm %s3249_s3, 128  ;;  %p3252_p9 = pneg %p3527_p7 }
  0x30   : > { %p3251_p8 = scmp.ne.s32.totalorder %s3249_s3, %s3250_s5  ;;  %p3256_p12 = scmp.lt.s32.totalorder %s3249_s3, %s3906_s0 }
  0x31   : > { %p3257_p2 = scmp.lt.s32.totalorder %s3255_s26, %s3250_s5 }
  0x32   : > { %p3253_p10 = pnand %p3252_p9, %p3251_p8 }
  0x33   : > { %p3258_p4 = por %p3257_p2, %p3256_p12 }
  0x34   : > { %p3254_p11 = pneg %p3253_p10 }
  0x36   : > { %p3259_p5 = pnand %p3258_p4, %p3254_p11 }
  0x38   : > { %3262 = shalt.err (!%p3259_p5)
}
  0x39   : > { %s3367_s29 = smov 128   ;;  %s3368_s1 = smov 8  }
  0x3a   : > { %3033 = dma.hbm_to_vmem [thread:$0]  (!%p3527_p7), %s355_s13, 2048, %s357_s21, %s344_s2, %s3367_s29, %s3367_s29, %s3368_s1  }
  0x3b   : > { %368 = sbr.rel (%p3450_p3) target bundleno = 983 (0x3d7), region = 56  ;;  %s3544_s20 = sand.u32 (!%p3450_p3), 1, %s3348_s10  }
  0x3c   : > { %s2319_s3 = sshll.u32 (!%p3450_p3), %s3544_s20, 7  ;;  %s371_s5 = scalar_lea.sflag (!%p3450_p3), [#allocation3], %s3544_s20 }
  0x3d   : > { %s3550_s25 = scalar_lea.vmem (!%p3450_p3), [#allocation2], %s2319_s3 }
  0x40   : > { %3323 = dma.done.wait (%p3507_p13), %s371_s5, 2048  }
  0x41   : > { %3325 = vsyncadd (%p3507_p13), %s371_s5, 4294965248 }
  0x42   : > { %3327 = dma.done.wait (%p49_p1), [#allocation6], 8256  }
  0x43   : > { %3329 = vsyncadd (%p49_p1), [#allocation6], 4294959040 }
  0x44   : > { %3331 = dma.done.wait (%p49_p1), [#allocation9], 5120  }
  0x45   : > { %3333 = vsyncadd (%p49_p1), [#allocation9], 4294962176 }
  0x46   : > { %3335 = dma.done.wait (%p49_p1), [#allocation12], 1024  }
  0x47   : > { %3337 = vsyncadd (%p49_p1), [#allocation12], 4294966272  ;;  %v2504_v0 = vld [vmem:[#allocation5 + $0xe0] sm:$0xf]  ;;  %v2891_v1 = vld [vmem:[#allocation5 + $0xec] sm:$0xf0] }
  0x48   : > { %v2632_v2 = vld [vmem:[#allocation5 + $0x1e0] sm:$0xf]  ;;  %v2505_v3 = vor.u32 %v2891_v1, %v2504_v0  ;;  %v2923_v4 = vld [vmem:[#allocation5 + $0x1ec] sm:$0xf0]  ;;  %v2889_v46 = vld [vmem:[#allocation5 + $0xe4] sm:$0xf] }
  0x49   : > { %v2488_v5 = vld [vmem:[#allocation5 + $0xc0] sm:$0xf]  ;;  %v2887_v6 = vld [vmem:[#allocation5 + $0xcc] sm:$0xf0]  ;;  %v2633_v7 = vor.u32 %v2923_v4, %v2632_v2  ;;  %v2506_v47 = vld [vmem:[#allocation5 + $0xf0] sm:$0xf0] }
  0x4a   : > { %v2616_v8 = vld [vmem:[#allocation5 + $0x1c0] sm:$0xf]  ;;  %v2919_v9 = vld [vmem:[#allocation5 + $0x1cc] sm:$0xf0]  ;;  %927 = vmatpush.bf16.msra.mxu0 %v2505_v3  ;;  %2974 = vmatpush.bf16.msra.mxu2 %v2505_v3  ;;  %v2489_v10 = vor.u32 %v2887_v6, %v2488_v5  ;;  %v2921_v49 = vld [vmem:[#allocation5 + $0x1e4] sm:$0xf]  ;;  %v2509_v58 = vor.u32 %v2889_v46, %v2506_v47 }
  0x4b   : > { %2982 = vmatpush.bf16.msra.mxu3 %v2633_v7  ;;  %v2617_v11 = vor.u32 %v2919_v9, %v2616_v8  ;;  %v2472_v12 = vld [vmem:[#allocation5 + $0xa0] sm:$0xf]  ;;  %v2883_v13 = vld [vmem:[#allocation5 + $0xac] sm:$0xf0]  ;;  %976 = vmatpush.bf16.msra.mxu1 %v2633_v7  ;;  %v2634_v50 = vld [vmem:[#allocation5 + $0x1f0] sm:$0xf0] }
  0x4c   : > { %v2600_v14 = vld [vmem:[#allocation5 + $0x1a0] sm:$0xf]  ;;  %v2915_v15 = vld [vmem:[#allocation5 + $0x1ac] sm:$0xf0]  ;;  %v2473_v16 = vor.u32 %v2883_v13, %v2472_v12  ;;  %v2846_v52 = vld [vmem:[%s3550_s25 + $0x4] sm:$0xf0]  ;;  %v2637_v60 = vor.u32 %v2921_v49, %v2634_v50 }
  0x4d   : > { %v2601_v17 = vor.u32 %v2915_v15, %v2600_v14  ;;  %v2456_v18 = vld [vmem:[#allocation5 + $0x80] sm:$0xf]  ;;  %v2879_v19 = vld [vmem:[#allocation5 + $0x8c] sm:$0xf0]  ;;  %v2854_v54 = vld [vmem:[%s3550_s25 + $0x44] sm:$0xf0] }
  0x4e   : > { %928 = vmatpush.bf16.msra.mxu0 %v2489_v10  ;;  %2975 = vmatpush.bf16.msra.mxu2 %v2489_v10  ;;  %v2584_v20 = vld [vmem:[#allocation5 + $0x180] sm:$0xf]  ;;  %v2911_v21 = vld [vmem:[#allocation5 + $0x18c] sm:$0xf0]  ;;  %v2457_v22 = vor.u32 %v2879_v19, %v2456_v18  ;;  %v2853_v56 = vld [vmem:[%s3550_s25 + $0x44] sm:$0xf] }
  0x4f   : > { %2983 = vmatpush.bf16.msra.mxu3 %v2617_v11  ;;  %977 = vmatpush.bf16.msra.mxu1 %v2617_v11  ;;  %v2585_v23 = vor.u32 %v2911_v21, %v2584_v20  ;;  %v2440_v24 = vld [vmem:[#allocation5 + $0x60] sm:$0xf]  ;;  %v2875_v25 = vld [vmem:[#allocation5 + $0x6c] sm:$0xf0]  ;;  %v2362_v57 = vld [vmem:[%s3550_s25 + $0x48] sm:$0xf0] }
  0x50   : > { %v2568_v26 = vld [vmem:[#allocation5 + $0x160] sm:$0xf]  ;;  %v2907_v27 = vld [vmem:[#allocation5 + $0x16c] sm:$0xf0]  ;;  %v2441_v28 = vor.u32 %v2875_v25, %v2440_v24  ;;  %v2885_v59 = vld [vmem:[#allocation5 + $0xc4] sm:$0xf]  ;;  %v3580_v4 = vor.u32 %v2853_v56, %v2362_v57 }
  0x51   : > { %v2569_v29 = vor.u32 %v2907_v27, %v2568_v26  ;;  %v2424_v30 = vld [vmem:[#allocation5 + $0x40] sm:$0xf]  ;;  %v2871_v31 = vld [vmem:[#allocation5 + $0x4c] sm:$0xf0]  ;;  %v2490_v61 = vld [vmem:[#allocation5 + $0xd0] sm:$0xf0] }
  0x52   : > { %929 = vmatpush.bf16.msra.mxu0 %v2473_v16  ;;  %2976 = vmatpush.bf16.msra.mxu2 %v2473_v16  ;;  %v2552_v32 = vld [vmem:[#allocation5 + $0x140] sm:$0xf]  ;;  %v2903_v33 = vld [vmem:[#allocation5 + $0x14c] sm:$0xf0]  ;;  %v2425_v34 = vor.u32 %v2871_v31, %v2424_v30  ;;  %v2845_v62 = vld [vmem:[%s3550_s25 + $0x4] sm:$0xf]  ;;  %v2493_v5 = vor.u32 %v2885_v59, %v2490_v61 }
  0x53   : > { %2984 = vmatpush.bf16.msra.mxu3 %v2601_v17  ;;  %978 = vmatpush.bf16.msra.mxu1 %v2601_v17  ;;  %v2553_v35 = vor.u32 %v2903_v33, %v2552_v32  ;;  %v2408_v36 = vld [vmem:[#allocation5 + $0x20] sm:$0xf]  ;;  %v2867_v37 = vld [vmem:[#allocation5 + $0x2c] sm:$0xf0]  ;;  %v2330_v63 = vld [vmem:[%s3550_s25 + $0x8] sm:$0xf0] }
  0x54   : > { %v2536_v38 = vld [vmem:[#allocation5 + $0x120] sm:$0xf]  ;;  %v2899_v39 = vld [vmem:[#allocation5 + $0x12c] sm:$0xf0]  ;;  %v2409_v40 = vor.u32 %v2867_v37, %v2408_v36  ;;  %v2917_v2 = vld [vmem:[#allocation5 + $0x1c4] sm:$0xf]  ;;  %v3582_v7 = vor.u32 %v2845_v62, %v2330_v63 }
  0x55   : > { %v2537_v41 = vor.u32 %v2899_v39, %v2536_v38  ;;  %v2392_v42 = vld [vmem:[#allocation5] sm:$0xf]  ;;  %v2863_v43 = vld [vmem:[#allocation5 + $0xc] sm:$0xf0]  ;;  %v2618_v3 = vld [vmem:[#allocation5 + $0x1d0] sm:$0xf0] }
  0x56   : > { %930 = vmatpush.bf16.msra.mxu0 %v2457_v22  ;;  %2977 = vmatpush.bf16.msra.mxu2 %v2457_v22  ;;  %v2520_v44 = vld [vmem:[#allocation5 + $0x100] sm:$0xf]  ;;  %v2895_v45 = vld [vmem:[#allocation5 + $0x10c] sm:$0xf0]  ;;  %v2393_v51 = vor.u32 %v2863_v43, %v2392_v42  ;;  %v2881_v6 = vld [vmem:[#allocation5 + $0xa4] sm:$0xf]  ;;  %v2621_v8 = vor.u32 %v2917_v2, %v2618_v3 }
  0x57   : > { %2985 = vmatpush.bf16.msra.mxu3 %v2585_v23  ;;  %979 = vmatpush.bf16.msra.mxu1 %v2585_v23  ;;  %v2328_v48 = vld [vmem:[%s3550_s25] sm:$0xf]  ;;  %v2521_v55 = vor.u32 %v2895_v45, %v2520_v44  ;;  %v2474_v9 = vld [vmem:[#allocation5 + $0xb0] sm:$0xf0]  ;;  %v2512_v10 = vld [vmem:[#allocation5 + $0xe8] sm:$0xf] }
  0x58   : > { %v2360_v53 = vld [vmem:[%s3550_s25 + $0x40] sm:$0xf]  ;;  %v3576_v0 = vor.u32 %v2846_v52, %v2328_v48  ;;  %v2892_v11 = vld [vmem:[#allocation5 + $0xf4] sm:$0xf0]  ;;  %v2913_v12 = vld [vmem:[#allocation5 + $0x1a4] sm:$0xf]  ;;  %v2477_v15 = vor.u32 %v2881_v6, %v2474_v9 }
  0x59   : > { %v3578_v1 = vor.u32 %v2854_v54, %v2360_v53  ;;  %v2602_v13 = vld [vmem:[#allocation5 + $0x1b0] sm:$0xf0]  ;;  %v2513_v14 = vor.u32 %v2892_v11, %v2512_v10  ;;  %v2877_v16 = vld [vmem:[#allocation5 + $0x84] sm:$0xf]  ;;  %v2496_v20 = vld [vmem:[#allocation5 + $0xc8] sm:$0xf] }
  0x5a   : > { %931 = vmatpush.bf16.msra.mxu0 %v2441_v28  ;;  %2978 = vmatpush.bf16.msra.mxu2 %v2441_v28  ;;  %v2458_v17 = vld [vmem:[#allocation5 + $0x90] sm:$0xf0]  ;;  %v2605_v18 = vor.u32 %v2913_v12, %v2602_v13  ;;  %v2909_v19 = vld [vmem:[#allocation5 + $0x184] sm:$0xf]  ;;  %v2888_v21 = vld [vmem:[#allocation5 + $0xd4] sm:$0xf0] }
  0x5b   : > { %2986 = vmatpush.bf16.msra.mxu3 %v2569_v29  ;;  %980 = vmatpush.bf16.msra.mxu1 %v2569_v29  ;;  %v2586_v22 = vld [vmem:[#allocation5 + $0x190] sm:$0xf0]  ;;  %v2497_v23 = vor.u32 %v2888_v21, %v2496_v20  ;;  %v2480_v24 = vld [vmem:[#allocation5 + $0xa8] sm:$0xf]  ;;  %v2884_v25 = vld [vmem:[#allocation5 + $0xb4] sm:$0xf0]  ;;  %v2461_v26 = vor.u32 %v2877_v16, %v2458_v17 }
  0x5c   : > { %v2336_v27 = vld [vmem:[%s3550_s25 + $0x10] sm:$0xf]  ;;  %v2589_v28 = vor.u32 %v2909_v19, %v2586_v22  ;;  %v2873_v29 = vld [vmem:[#allocation5 + $0x64] sm:$0xf]  ;;  %v2442_v30 = vld [vmem:[#allocation5 + $0x70] sm:$0xf0]  ;;  %v2481_v32 = vor.u32 %v2884_v25, %v2480_v24 }
  0x5d   : > { %v2905_v31 = vld [vmem:[#allocation5 + $0x164] sm:$0xf]  ;;  %v2570_v33 = vld [vmem:[#allocation5 + $0x170] sm:$0xf0]  ;;  %v2848_v36 = vld [vmem:[%s3550_s25 + $0x14] sm:$0xf0] }
  0x5e   : > { %932 = vmatpush.bf16.msra.mxu0 %v2425_v34  ;;  %2979 = vmatpush.bf16.msra.mxu2 %v2425_v34  ;;  %v2464_v34 = vld [vmem:[#allocation5 + $0x88] sm:$0xf]  ;;  %v2368_v37 = vld [vmem:[%s3550_s25 + $0x50] sm:$0xf]  ;;  %v2856_v38 = vld [vmem:[%s3550_s25 + $0x54] sm:$0xf0]  ;;  %v2573_v43 = vor.u32 %v2905_v31, %v2570_v33  ;;  %v3596_v48 = vor.u32 %v2848_v36, %v2336_v27 }
  0x5f   : > { %2987 = vmatpush.bf16.msra.mxu3 %v2553_v35  ;;  %981 = vmatpush.bf16.msra.mxu1 %v2553_v35  ;;  %v2880_v35 = vld [vmem:[#allocation5 + $0x94] sm:$0xf0]  ;;  %v2855_v39 = vld [vmem:[%s3550_s25 + $0x54] sm:$0xf]  ;;  %v2338_v44 = vld [vmem:[%s3550_s25 + $0x18] sm:$0xf0]  ;;  %v3598_v49 = vor.u32 %v2856_v38, %v2368_v37 }
  0x60   : > { %v2847_v42 = vld [vmem:[%s3550_s25 + $0x14] sm:$0xf]  ;;  %v2869_v45 = vld [vmem:[#allocation5 + $0x44] sm:$0xf]  ;;  %v2465_v47 = vor.u32 %v2880_v35, %v2464_v34  ;;  %v2448_v56 = vld [vmem:[#allocation5 + $0x68] sm:$0xf] }
  0x61   : > { %v2426_v46 = vld [vmem:[#allocation5 + $0x50] sm:$0xf0]  ;;  %v2901_v50 = vld [vmem:[#allocation5 + $0x144] sm:$0xf]  ;;  %v3602_v53 = vor.u32 %v2847_v42, %v2338_v44  ;;  %v2876_v57 = vld [vmem:[#allocation5 + $0x74] sm:$0xf0] }
  0x62   : > { %933 = vmatpush.bf16.msra.mxu0 %v2409_v40  ;;  %2980 = vmatpush.bf16.msra.mxu2 %v2409_v40  ;;  %v2370_v40 = vld [vmem:[%s3550_s25 + $0x58] sm:$0xf0]  ;;  %v2429_v54 = vor.u32 %v2869_v45, %v2426_v46  ;;  %v2865_v59 = vld [vmem:[#allocation5 + $0x24] sm:$0xf]  ;;  %v2538_v63 = vld [vmem:[#allocation5 + $0x130] sm:$0xf0] }
  0x63   : > { %2988 = vmatpush.bf16.msra.mxu3 %v2537_v41  ;;  %982 = vmatpush.bf16.msra.mxu1 %v2537_v41  ;;  %v2445_v41 = vor.u32 %v2873_v29, %v2442_v30  ;;  %v3600_v52 = vor.u32 %v2855_v39, %v2370_v40  ;;  %v2897_v61 = vld [vmem:[#allocation5 + $0x124] sm:$0xf]  ;;  %v2432_v3 = vld [vmem:[#allocation5 + $0x48] sm:$0xf]  ;;  %v2924_v9 = vld [vmem:[#allocation5 + $0x1f4] sm:$0xf0] }
  0x64   : > { %v2541_v2 = vor.u32 %v2897_v61, %v2538_v63  ;;  %v2640_v6 = vld [vmem:[#allocation5 + $0x1e8] sm:$0xf]  ;;  %v2861_v10 = vld [vmem:[#allocation5 + $0x4] sm:$0xf]  ;;  %v2394_v11 = vld [vmem:[#allocation5 + $0x10] sm:$0xf0] }
  0x65   : > { %v2641_v12 = vor.u32 %v2924_v9, %v2640_v6  ;;  %v2416_v13 = vld [vmem:[#allocation5 + $0x28] sm:$0xf]  ;;  %v2397_v16 = vor.u32 %v2861_v10, %v2394_v11  ;;  %v2920_v17 = vld [vmem:[#allocation5 + $0x1d4] sm:$0xf0]  ;;  %v2522_v19 = vld [vmem:[#allocation5 + $0x110] sm:$0xf0] }
  0x66   : > { %934 = vmatpush.bf16.msra.mxu0 %v2393_v51  ;;  %2981 = vmatpush.bf16.msra.mxu2 %v2393_v51  ;;  %v2554_v51 = vld [vmem:[#allocation5 + $0x150] sm:$0xf0]  ;;  %v2344_v20 = vld [vmem:[%s3550_s25 + $0x20] sm:$0xf]  ;;  %v2400_v25 = vld [vmem:[#allocation5 + $0x8] sm:$0xf] }
  0x67   : > { %2989 = vmatpush.bf16.msra.mxu3 %v2521_v55  ;;  %983 = vmatpush.bf16.msra.mxu1 %v2521_v55  ;;  %v2557_v55 = vor.u32 %v2901_v50, %v2554_v51  ;;  %v2376_v27 = vld [vmem:[%s3550_s25 + $0x60] sm:$0xf]  ;;  %v2857_v29 = vld [vmem:[%s3550_s25 + $0x64] sm:$0xf]  ;;  %v2378_v30 = vld [vmem:[%s3550_s25 + $0x68] sm:$0xf0] }
  0x68   : > { %v2608_v31 = vld [vmem:[#allocation5 + $0x1a8] sm:$0xf]  ;;  %v2849_v33 = vld [vmem:[%s3550_s25 + $0x24] sm:$0xf]  ;;  %v2346_v34 = vld [vmem:[%s3550_s25 + $0x28] sm:$0xf0]  ;;  %v3620_v38 = vor.u32 %v2857_v29, %v2378_v30 }
  0x69   : > { %935 = vmatmul.bf16.vlgmr.msra.gmra.mxu0 %v3576_v0  ;;  %955 = vmatmul.bf16.vlgmr.msra.gmra.mxu2 %v3578_v1  ;;  %v3622_v40 = vor.u32 %v2849_v33, %v2346_v34  ;;  %v2912_v42 = vld [vmem:[#allocation5 + $0x194] sm:$0xf0]  ;;  %v2514_v44 = vld [vmem:[#allocation5 + $0xf8] sm:$0xf0]  ;;  %v2922_v46 = vld [vmem:[#allocation5 + $0x1ec] sm:$0xf] }
  0x6a   : > { %1025 = vmatpush.bf16.msrb.mxu2 %v2509_v58  ;;  %1004 = vmatmul.bf16.vlgmr.msra.gmra.mxu3 %v3580_v4  ;;  %v2449_v58 = vor.u32 %v2876_v57, %v2448_v56  ;;  %v2642_v50 = vld [vmem:[#allocation5 + $0x1f8] sm:$0xf0]  ;;  %v2560_v57 = vld [vmem:[#allocation5 + $0x148] sm:$0xf]  ;;  %v2384_v61 = vld [vmem:[%s3550_s25 + $0x70] sm:$0xf] }
  0x6b   : > { %1074 = vmatpush.bf16.msrb.mxu3 %v2637_v60  ;;  %984 = vmatmul.bf16.vlgmr.msra.gmra.mxu1 %v3582_v7  ;;  %v2410_v60 = vld [vmem:[#allocation5 + $0x30] sm:$0xf0]  ;;  %v2645_v51 = vor.u32 %v2922_v46, %v2642_v50  ;;  %v2900_v6 = vld [vmem:[#allocation5 + $0x134] sm:$0xf0]  ;;  %v2354_v9 = vld [vmem:[%s3550_s25 + $0x38] sm:$0xf0] }
  0x6c   : > { %1123 = vmatpush.bf16.msrb.mxu0 %v2513_v14  ;;  %v2413_v62 = vor.u32 %v2865_v59, %v2410_v60  ;;  %v2868_v14 = vld [vmem:[#allocation5 + $0x34] sm:$0xf0]  ;;  %1172 = vmatpush.bf16.msrb.mxu1 %v2641_v12  ;;  %v2352_v59 = vld [vmem:[%s3550_s25 + $0x30] sm:$0xf]  ;;  %v2859_v63 = vld [vmem:[%s3550_s25 + $0x74] sm:$0xf] }
  0x6d   : > { %v2417_v21 = vor.u32 %v2868_v14, %v2416_v13  ;;  %v2852_v60 = vld [vmem:[%s3550_s25 + $0x34] sm:$0xf0]  ;;  %v2878_v30 = vld [vmem:[#allocation5 + $0x8c] sm:$0xf]  ;;  %v2594_v34 = vld [vmem:[#allocation5 + $0x198] sm:$0xf0] }
  0x6e   : > { %1026 = vmatpush.bf16.msrb.mxu2 %v2493_v5  ;;  %v2872_v5 = vld [vmem:[#allocation5 + $0x54] sm:$0xf0]  ;;  %v3636_v10 = vor.u32 %v2852_v60, %v2352_v59  ;;  %v2870_v46 = vld [vmem:[#allocation5 + $0x4c] sm:$0xf]  ;;  %v2418_v60 = vld [vmem:[#allocation5 + $0x38] sm:$0xf0] }
  0x6f   : > { %1075 = vmatpush.bf16.msrb.mxu3 %v2621_v8  ;;  %v2433_v8 = vor.u32 %v2872_v5, %v2432_v3  ;;  %v2386_v3 = vld [vmem:[%s3550_s25 + $0x78] sm:$0xf0]  ;;  %v2544_v5 = vld [vmem:[#allocation5 + $0x128] sm:$0xf]  ;;  %v2902_v50 = vld [vmem:[#allocation5 + $0x14c] sm:$0xf] }
  0x70   : > { %1124 = vmatpush.bf16.msrb.mxu0 %v2497_v23  ;;  %v2850_v23 = vld [vmem:[%s3550_s25 + $0x24] sm:$0xf0]  ;;  %v3640_v12 = vor.u32 %v2859_v63, %v2386_v3  ;;  %v2545_v13 = vor.u32 %v2900_v6, %v2544_v5  ;;  %v2866_v59 = vld [vmem:[#allocation5 + $0x2c] sm:$0xf]  ;;  %v2546_v63 = vld [vmem:[#allocation5 + $0x138] sm:$0xf0] }
  0x71   : > { %v3616_v36 = vor.u32 %v2850_v23, %v2344_v20  ;;  %v2918_v20 = vld [vmem:[#allocation5 + $0x1cc] sm:$0xf]  ;;  %s3854_s22 = scalar_lea.vmem [#allocation13], %s2319_s3  ;;  %s2973_s26 = sshll.u32 %s3445_s16, 7 }
  0x72   : > { %1027 = vmatpush.bf16.msrb.mxu2 %v2477_v15  ;;  %v2624_v15 = vld [vmem:[#allocation5 + $0x1c8] sm:$0xf]  ;;  %s2181_s29 = scalar_lea.hbm %s3915_s9, %s2973_s26  ;;  %s2182_s1 = sshll.u32 %s3854_s22, 4  ;;  %s2183_s1 = int_to_ptr.vmem [resolvable:$true] %s2182_s1 }
  0x73   : > { %1076 = vmatpush.bf16.msrb.mxu3 %v2605_v18  ;;  %v2893_v18 = vld [vmem:[#allocation5 + $0x104] sm:$0xf]  ;;  %v2625_v24 = vor.u32 %v2920_v17, %v2624_v15  ;;  %v2528_v15 = vld [vmem:[#allocation5 + $0x108] sm:$0xf]  ;;  %v2886_v17 = vld [vmem:[#allocation5 + $0xcc] sm:$0xf] }
  0x74   : > { %1125 = vmatpush.bf16.msrb.mxu0 %v2481_v32  ;;  %v2525_v22 = vor.u32 %v2893_v18, %v2522_v19  ;;  %v2916_v32 = vld [vmem:[#allocation5 + $0x1b4] sm:$0xf0]  ;;  %v2498_v18 = vld [vmem:[#allocation5 + $0xd8] sm:$0xf0]  ;;  %s2184_s3 = sshll.u32 %s2181_s29, 4  ;;  %s2170_s5 = scalar_lea.sflag [#allocation4], %s3544_s20  ;;  %s2185_s3 = int_to_ptr.hbm [resolvable:$true] %s2184_s3 }
  0x75   : > { %1173 = vmatpush.bf16.msrb.mxu1 %v2625_v24  ;;  %v2609_v39 = vor.u32 %v2916_v32, %v2608_v31  ;;  %v2882_v24 = vld [vmem:[#allocation5 + $0xac] sm:$0xf]  ;;  %v2466_v31 = vld [vmem:[#allocation5 + $0x98] sm:$0xf0]  ;;  %s3298_s23 = scalar_lea.hbm %s3915_s9, 256 }
  0x76   : > { %1028 = vmatpush.bf16.msrb.mxu2 %v2461_v26  ;;  %v2864_v26 = vld [vmem:[#allocation5 + $0x14] sm:$0xf0]  ;;  %v2910_v32 = vld [vmem:[#allocation5 + $0x18c] sm:$0xf]  ;;  %v2469_v33 = vor.u32 %v2878_v30, %v2466_v31 }
  0x77   : > { %1077 = vmatpush.bf16.msrb.mxu3 %v2589_v28  ;;  %v2858_v28 = vld [vmem:[%s3550_s25 + $0x64] sm:$0xf0]  ;;  %v2401_v35 = vor.u32 %v2864_v26, %v2400_v25  ;;  %v2482_v25 = vld [vmem:[#allocation5 + $0xb8] sm:$0xf0]  ;;  %v2914_v26 = vld [vmem:[#allocation5 + $0x1ac] sm:$0xf] }
  0x78   : > { %1126 = vmatpush.bf16.msrb.mxu0 %v2465_v47  ;;  %v3618_v37 = vor.u32 %v2858_v28, %v2376_v27  ;;  %v2485_v27 = vor.u32 %v2882_v24, %v2482_v25  ;;  %v2610_v28 = vld [vmem:[#allocation5 + $0x1b8] sm:$0xf0]  ;;  %v2894_v25 = vld [vmem:[#allocation5 + $0x10c] sm:$0xf] }
  0x79   : > { %940 = vmatmul.bf16.gmra.mxu0 %v3596_v48  ;;  %960 = vmatmul.bf16.gmra.mxu2 %v3598_v49  ;;  %v2613_v29 = vor.u32 %v2914_v26, %v2610_v28  ;;  %v2402_v24 = vld [vmem:[#allocation5 + $0x18] sm:$0xf0] }
  0x7a   : > { %1029 = vmatpush.bf16.msrb.mxu2 %v2445_v41  ;;  %1009 = vmatmul.bf16.gmra.mxu3 %v3600_v52  ;;  %v2592_v41 = vld [vmem:[#allocation5 + $0x188] sm:$0xf] }
  0x7b   : > { %1078 = vmatpush.bf16.msrb.mxu3 %v2573_v43  ;;  %989 = vmatmul.bf16.gmra.mxu1 %v3602_v53  ;;  %v2890_v43 = vld [vmem:[#allocation5 + $0xec] sm:$0xf]  ;;  %v2593_v45 = vor.u32 %v2912_v42, %v2592_v41  ;;  %v2450_v41 = vld [vmem:[#allocation5 + $0x78] sm:$0xf0] }
  0x7c   : > { %1127 = vmatpush.bf16.msrb.mxu0 %v2449_v58  ;;  %1174 = vmatpush.bf16.msrb.mxu1 %v2609_v39  ;;  %v2517_v47 = vor.u32 %v2890_v43, %v2514_v44  ;;  %v2904_v58 = vld [vmem:[#allocation5 + $0x154] sm:$0xf0]  ;;  %v2874_v39 = vld [vmem:[#allocation5 + $0x6c] sm:$0xf]  ;;  %v2578_v44 = vld [vmem:[#allocation5 + $0x178] sm:$0xf0] }
  0x7d   : > { %v2906_v42 = vld [vmem:[#allocation5 + $0x16c] sm:$0xf]  ;;  %v2453_v43 = vor.u32 %v2874_v39, %v2450_v41  ;;  %v2939_v41 = vld [vmem:[#allocation8 + $0x70] sm:$0xff] }
  0x7e   : > { %1030 = vmatpush.bf16.msrb.mxu2 %v2429_v54  ;;  %v2576_v54 = vld [vmem:[#allocation5 + $0x168] sm:$0xf]  ;;  %v2926_v39 = vld [vmem:[#allocation8 + $0x8] sm:$0xff] }
  0x7f   : > { %1079 = vmatpush.bf16.msrb.mxu3 %v2557_v55  ;;  %v2908_v55 = vld [vmem:[#allocation5 + $0x174] sm:$0xf0] }
  0x80   : > { %1128 = vmatpush.bf16.msrb.mxu0 %v2433_v8  ;;  %1175 = vmatpush.bf16.msrb.mxu1 %v2593_v45  ;;  %v2577_v56 = vor.u32 %v2908_v55, %v2576_v54  ;;  %v2851_v8 = vld [vmem:[%s3550_s25 + $0x34] sm:$0xf]  ;;  %v2581_v45 = vor.u32 %v2906_v42, %v2578_v44  ;;  %v2562_v54 = vld [vmem:[#allocation5 + $0x158] sm:$0xf0] }
  0x81   : > { %v3642_v14 = vor.u32 %v2851_v8, %v2354_v9  ;;  %v2565_v55 = vor.u32 %v2902_v50, %v2562_v54  ;;  %v2931_v8 = vld [vmem:[#allocation8 + $0x30] sm:$0xff] }
  0x82   : > { %1031 = vmatpush.bf16.msrb.mxu2 %v2413_v62  ;;  %v2860_v62 = vld [vmem:[%s3550_s25 + $0x74] sm:$0xf0]  ;;  %s3292_s25 = sshra.s32 %s2185_s3, 4  ;;  %s3293_s25 = int_to_ptr.hbm [resolvable:$true] %s3292_s25 }
  0x83   : > { %1080 = vmatpush.bf16.msrb.mxu3 %v2541_v2  ;;  %v2561_v2 = vor.u32 %v2904_v58, %v2560_v57  ;;  %v3638_v11 = vor.u32 %v2860_v62, %v2384_v61  ;;  %v2932_v58 = vld [vmem:[#allocation8 + $0x38] sm:$0xff]  ;;  %v2898_v61 = vld [vmem:[#allocation5 + $0x12c] sm:$0xf]  ;;  %v2421_v62 = vor.u32 %v2866_v59, %v2418_v60  ;;  %s3294_s2 = scalar_lea.hbm %s3293_s25, 128  ;;  %p3299_p13 = scmp.lt.s32.totalorder %s3293_s25, %s3915_s9 }
  0x84   : > { %1129 = vmatpush.bf16.msrb.mxu0 %v2417_v21  ;;  %1176 = vmatpush.bf16.msrb.mxu1 %v2577_v56  ;;  %v2501_v21 = vor.u32 %v2886_v17, %v2498_v18  ;;  %v3664_v56 = vld [vmem:[#allocation7] sm:$0xf]  ;;  %v2549_v3 = vor.u32 %v2898_v61, %v2546_v63  ;;  %v2929_v18 = vld [vmem:[#allocation8 + $0x20] sm:$0xff]  ;;  %p3295_p1 = scmp.ne.s32.totalorder %s3293_s25, %s3294_s2  ;;  %p3300_p7 = scmp.lt.s32.totalorder %s3298_s23, %s3294_s2 }
  0x85   : > { %v3667_v57 = vperm.slane %v3664_v56, 0 }
  0x86   : > { %1032 = vmatpush.bf16.msrb.mxu2 %v2397_v16  ;;  %v2896_v16 = vld [vmem:[#allocation5 + $0x114] sm:$0xf0]  ;;  %p3296_p3 = pnand %p3295_p1, %p3511_p0  ;;  %p3301_p8 = por %p3300_p7, %p3299_p13 }
  0x87   : > { %1081 = vmatpush.bf16.msrb.mxu3 %v2525_v22  ;;  %v2529_v19 = vor.u32 %v2896_v16, %v2528_v15  ;;  %v2626_v22 = vld [vmem:[#allocation5 + $0x1d8] sm:$0xf0] }
  0x88   : > { %1130 = vmatpush.bf16.msrb.mxu0 %v2401_v35  ;;  %1177 = vmatpush.bf16.msrb.mxu1 %v2561_v2  ;;  %v2629_v23 = vor.u32 %v2918_v20, %v2626_v22  ;;  %v2597_v35 = vor.u32 %v2910_v32, %v2594_v34  ;;  %v2928_v22 = vld [vmem:[#allocation8 + $0x18] sm:$0xff]  ;;  %p3297_p5 = pneg %p3296_p3 }
  0x89   : > { %945 = vmatmul.bf16.gmra.mxu0 %v3616_v36  ;;  %965 = vmatmul.bf16.gmra.mxu2 %v3618_v37  ;;  %v2940_v34 = vld [vmem:[#allocation8 + $0x78] sm:$0xff] }
  0x8a   : > { %1014 = vmatmul.bf16.gmra.mxu3 %v3620_v38  ;;  %1221 = vmatpush.bf16.msra.mxu2 %v2517_v47  ;;  %v2434_v47 = vld [vmem:[#allocation5 + $0x58] sm:$0xf0]  ;;  %p3302_p9 = pnand %p3301_p8, %p3297_p5 }
  0x8b   : > { %994 = vmatmul.bf16.gmra.mxu1 %v3622_v40  ;;  %1270 = vmatpush.bf16.msra.mxu3 %v2645_v51  ;;  %v2437_v51 = vor.u32 %v2870_v46, %v2434_v47  ;;  %v2925_v46 = vld [vmem:[#allocation8] sm:$0xff]  ;;  %v2938_v47 = vld [vmem:[#allocation8 + $0x68] sm:$0xff] }
  0x8c   : > { %1178 = vmatpush.bf16.msrb.mxu1 %v2545_v13  ;;  %1675 = vmatpush.bf16.msra.mxu0 %v2932_v58  ;;  %v2930_v13 = vld [vmem:[#allocation8 + $0x28] sm:$0xff]  ;;  %v2937_v58 = vld [vmem:[#allocation8 + $0x60] sm:$0xff] }
  0x8e   : > { %1222 = vmatpush.bf16.msra.mxu2 %v2501_v21 }
  0x8f   : > { %1271 = vmatpush.bf16.msra.mxu3 %v2629_v23  ;;  %v2862_v23 = vld [vmem:[#allocation5 + $0xc] sm:$0xf] }
  0x90   : > { %1179 = vmatpush.bf16.msrb.mxu1 %v2529_v19  ;;  %1676 = vmatpush.bf16.msra.mxu0 %v2931_v8  ;;  %v2405_v26 = vor.u32 %v2862_v23, %v2402_v24  ;;  %v2948_v24 = vld [vmem:[#allocation8 + $0xb8] sm:$0xff] }
  0x92   : > { %1223 = vmatpush.bf16.msra.mxu2 %v2485_v27  ;;  %v2530_v27 = vld [vmem:[#allocation5 + $0x118] sm:$0xf0] }
  0x93   : > { %1272 = vmatpush.bf16.msra.mxu3 %v2613_v29  ;;  %v2533_v30 = vor.u32 %v2894_v25, %v2530_v27 }
  0x94   : > { %1677 = vmatpush.bf16.msra.mxu0 %v2930_v13  ;;  %1724 = vmatpush.bf16.msra.mxu1 %v2940_v34 }
  0x96   : > { %1224 = vmatpush.bf16.msra.mxu2 %v2469_v33  ;;  %v2927_v33 = vld [vmem:[#allocation8 + $0x10] sm:$0xff] }
  0x97   : > { %1273 = vmatpush.bf16.msra.mxu3 %v2597_v35 }
  0x98   : > { %1678 = vmatpush.bf16.msra.mxu0 %v2929_v18  ;;  %1725 = vmatpush.bf16.msra.mxu1 %v2939_v41 }
  0x99   : > { %950 = vmatmul.bf16.gmra.mxu0 %v3636_v10  ;;  %970 = vmatmul.bf16.gmra.mxu2 %v3638_v11 }
  0x9a   : > { %1019 = vmatmul.bf16.gmra.mxu3 %v3640_v12  ;;  %1225 = vmatpush.bf16.msra.mxu2 %v2453_v43 }
  0x9b   : > { %999 = vmatmul.bf16.gmra.mxu1 %v3642_v14  ;;  %1274 = vmatpush.bf16.msra.mxu3 %v2581_v45 }
  0x9c   : > { %1679 = vmatpush.bf16.msra.mxu0 %v2928_v22  ;;  %1726 = vmatpush.bf16.msra.mxu1 %v2938_v47  ;;  %v2933_v22 = vld [vmem:[#allocation8 + $0x40] sm:$0xff] }
  0x9e   : > { %1226 = vmatpush.bf16.msra.mxu2 %v2437_v51 }
  0x9f   : > { %1275 = vmatpush.bf16.msra.mxu3 %v2565_v55 }
  0xa0   : > { %1680 = vmatpush.bf16.msra.mxu0 %v2927_v33  ;;  %1727 = vmatpush.bf16.msra.mxu1 %v2937_v58  ;;  %v2947_v58 = vld [vmem:[#allocation8 + $0xb0] sm:$0xff] }
  0xa2   : > { %1227 = vmatpush.bf16.msra.mxu2 %v2421_v62 }
  0xa3   : > { %1276 = vmatpush.bf16.msra.mxu3 %v2549_v3 }
  0xa4   : > { %1681 = vmatpush.bf16.msra.mxu0 %v2926_v39  ;;  %v2956_v39 = vld [vmem:[#allocation8 + $0xf8] sm:$0xff] }
  0xa6   : > { %1228 = vmatpush.bf16.msra.mxu2 %v2405_v26 }
  0xa7   : > { %1277 = vmatpush.bf16.msra.mxu3 %v2533_v30 }
  0xa8   : > { %1682 = vmatpush.bf16.msra.mxu0 %v2925_v46 }
  0xa9   : > { %1033 = vmatmul.bf16.vlgmr.msrb.gmra.mxu2 %v3576_v0  ;;  %1131 = vmatmul.bf16.vlgmr.msrb.gmra.mxu0 %v3576_v0 }
  0xaa   : > { %1082 = vmatmul.bf16.vlgmr.msrb.gmra.mxu3 %v3582_v7  ;;  %1773 = vmatpush.bf16.msrb.mxu2 %v2948_v24 }
  0xab   : > { %1180 = vmatmul.bf16.vlgmr.msrb.gmra.mxu1 %v3582_v7  ;;  %1822 = vmatpush.bf16.msrb.mxu3 %v2956_v39 }
  0xae   : > { %1774 = vmatpush.bf16.msrb.mxu2 %v2947_v58  ;;  %v2945_v58 = vld [vmem:[#allocation8 + $0xa0] sm:$0xff] }
  0xb9   : > { %1038 = vmatmul.bf16.gmra.mxu2 %v3596_v48  ;;  %1136 = vmatmul.bf16.gmra.mxu0 %v3596_v48 }
  0xba   : > { %1087 = vmatmul.bf16.gmra.mxu3 %v3602_v53 }
  0xbb   : > { %1185 = vmatmul.bf16.gmra.mxu1 %v3602_v53 }
  0xc9   : > { %1043 = vmatmul.bf16.gmra.mxu2 %v3616_v36  ;;  %1141 = vmatmul.bf16.gmra.mxu0 %v3616_v36 }
  0xca   : > { %1092 = vmatmul.bf16.gmra.mxu3 %v3622_v40 }
  0xcb   : > { %1190 = vmatmul.bf16.gmra.mxu1 %v3622_v40 }
  0xd9   : > { %1048 = vmatmul.bf16.gmra.mxu2 %v3636_v10  ;;  %1146 = vmatmul.bf16.gmra.mxu0 %v3636_v10 }
  0xda   : > { %1097 = vmatmul.bf16.gmra.mxu3 %v3642_v14 }
  0xdb   : > { %1195 = vmatmul.bf16.gmra.mxu1 %v3642_v14 }
  0xe6   : > { %v936_v42 = vpop.f32.mrf.mxu0 }
  0xe7   : > { %v937_v18 = vadd.f32 %v936_v42, %v3667_v57 }
  0xe8   : > { %v985_v50 = vpop.f32.mrf.mxu1 }
  0xe9   : > { %1053 = vmatmul.bf16.gmra.mxu2 %v3578_v1  ;;  %1151 = vmatmul.bf16.gmra.mxu0 %v3578_v1  ;;  %v986_v27 = vadd.f32 %v985_v50, %v937_v18 }
  0xea   : > { %1102 = vmatmul.bf16.gmra.mxu3 %v3580_v4 }
  0xeb   : > { %1200 = vmatmul.bf16.gmra.mxu1 %v3580_v4  ;;  %v1319_v34 = vmax.f32 %v986_v27, 0.0 }
  0xec   : > { %v956_v2 = vpop.f32.mrf.mxu2 }
  0xed   : > { %v957_v5 = vadd.f32 %v956_v2, %v3667_v57  ;;  %v1005_v6 = vpop.f32.mrf.mxu3  ;;  %v2936_v2 = vld [vmem:[#allocation8 + $0x58] sm:$0xff] }
  0xee   : > { %v938_v60 = vpop.f32.mrf.mxu0  ;;  %1728 = vmatpush.bf16.msra.mxu1 %v2936_v2  ;;  %v3708_v2 = vperm.slane %v3664_v56, 1 }
  0xef   : > { %v1006_v9 = vadd.f32 %v1005_v6, %v957_v5  ;;  %v2935_v6 = vld [vmem:[#allocation8 + $0x50] sm:$0xff] }
  0xf0   : > { %v987_v5 = vpop.f32.mrf.mxu1 }
  0xf1   : > { %v1351_v20 = vmax.f32 %v1006_v9, 0.0 }
  0xf2   : > { %1729 = vmatpush.bf16.msra.mxu1 %v2935_v6 }
  0xf4   : > { %v958_v15 = vpop.f32.mrf.mxu2 }
  0xf5   : > { %v959_v16 = vadd.f32 %v958_v15, %v3667_v57  ;;  %v1007_v17 = vpop.f32.mrf.mxu3  ;;  %v2934_v15 = vld [vmem:[#allocation8 + $0x48] sm:$0xff] }
  0xf6   : > { %1730 = vmatpush.bf16.msra.mxu1 %v2934_v15 }
  0xf7   : > { %v1008_v19 = vadd.f32 %v1007_v17, %v959_v16  ;;  %v941_v16 = vpop.f32.mrf.mxu0 }
  0xf8   : > { %v990_v23 = vpop.f32.mrf.mxu1  ;;  %v942_v47 = vadd.f32 %v941_v16, %v3667_v57 }
  0xf9   : > { %v1355_v21 = vmax.f32 %v1008_v19, 0.0  ;;  %1058 = vmatmul.bf16.gmra.mxu2 %v3598_v49  ;;  %1156 = vmatmul.bf16.gmra.mxu0 %v3598_v49  ;;  %v939_v19 = vadd.f32 %v938_v60, %v3667_v57 }
  0xfa   : > { %1107 = vmatmul.bf16.gmra.mxu3 %v3600_v52  ;;  %1731 = vmatpush.bf16.msra.mxu1 %v2933_v22 }
  0xfb   : > { %1205 = vmatmul.bf16.gmra.mxu1 %v3600_v52  ;;  %v3679_v28 = vpack.c.bf16 %v1355_v21, %v1351_v20 }
  0xfc   : > { %v961_v29 = vpop.f32.mrf.mxu2 }
  0xfd   : > { %v962_v31 = vadd.f32 %v961_v29, %v3667_v57  ;;  %v1010_v32 = vpop.f32.mrf.mxu3  ;;  %v988_v29 = vadd.f32 %v987_v5, %v939_v19 }
  0xff   : > { %v1011_v35 = vadd.f32 %v1010_v32, %v962_v31  ;;  %v943_v33 = vpop.f32.mrf.mxu0 }
 0x100   : > { %v992_v41 = vpop.f32.mrf.mxu1  ;;  %v944_v50 = vadd.f32 %v943_v33, %v3667_v57 }
 0x101   : > { %v1359_v54 = vmax.f32 %v1011_v35, 0.0  ;;  %v1323_v35 = vmax.f32 %v988_v29, 0.0 }
 0x104   : > { %v963_v43 = vpop.f32.mrf.mxu2 }
 0x105   : > { %v964_v44 = vadd.f32 %v963_v43, %v3667_v57  ;;  %v1012_v45 = vpop.f32.mrf.mxu3  ;;  %v1383_v43 = vpack.c.bf16 %v1323_v35, %v1319_v34 }
 0x107   : > { %v1013_v51 = vadd.f32 %v1012_v45, %v964_v44 }
 0x108   : > { %v995_v5 = vpop.f32.mrf.mxu1 }
 0x109   : > { %v1363_v55 = vmax.f32 %v1013_v51, 0.0  ;;  %1063 = vmatmul.bf16.gmra.mxu2 %v3618_v37  ;;  %1161 = vmatmul.bf16.gmra.mxu0 %v3618_v37 }
 0x10a   : > { %1112 = vmatmul.bf16.gmra.mxu3 %v3620_v38 }
 0x10b   : > { %1210 = vmatmul.bf16.gmra.mxu1 %v3620_v38  ;;  %v3687_v59 = vpack.c.bf16 %v1363_v55, %v1359_v54  ;;  %v946_v55 = vpop.f32.mrf.mxu0 }
 0x10c   : > { %v966_v61 = vpop.f32.mrf.mxu2 }
 0x10d   : > { %v967_v62 = vadd.f32 %v966_v61, %v3667_v57  ;;  %v1015_v63 = vpop.f32.mrf.mxu3 }
 0x10f   : > { %v1016_v3 = vadd.f32 %v1015_v63, %v967_v62  ;;  %v991_v62 = vadd.f32 %v990_v23, %v942_v47  ;;  %v993_v63 = vadd.f32 %v992_v41, %v944_v50  ;;  %v2954_v41 = vld [vmem:[#allocation8 + $0xe8] sm:$0xff] }
 0x111   : > { %v1367_v20 = vmax.f32 %v1016_v3, 0.0  ;;  %v1327_v6 = vmax.f32 %v991_v62, 0.0 }
 0x114   : > { %v968_v8 = vpop.f32.mrf.mxu2 }
 0x115   : > { %v969_v9 = vadd.f32 %v968_v8, %v3667_v57  ;;  %v1017_v13 = vpop.f32.mrf.mxu3  ;;  %v1331_v8 = vmax.f32 %v993_v63, 0.0 }
 0x117   : > { %v1018_v17 = vadd.f32 %v1017_v13, %v969_v9  ;;  %v2955_v9 = vld [vmem:[#allocation8 + $0xf0] sm:$0xff]  ;;  %v948_v13 = vpop.f32.mrf.mxu0  ;;  %v1387_v18 = vpack.c.bf16 %v1331_v8, %v1327_v6 }
 0x118   : > { %1823 = vmatpush.bf16.msrb.mxu3 %v2955_v9  ;;  %v949_v22 = vadd.f32 %v948_v13, %v3667_v57  ;;  %v2953_v9 = vld [vmem:[#allocation8 + $0xe0] sm:$0xff] }
 0x119   : > { %v1371_v21 = vmax.f32 %v1018_v17, 0.0  ;;  %1068 = vmatmul.bf16.gmra.mxu2 %v3638_v11  ;;  %1166 = vmatmul.bf16.gmra.mxu0 %v3638_v11 }
 0x11a   : > { %1117 = vmatmul.bf16.gmra.mxu3 %v3640_v12 }
 0x11b   : > { %1215 = vmatmul.bf16.gmra.mxu1 %v3640_v12  ;;  %v3697_v25 = vpack.c.bf16 %v1371_v21, %v1367_v20  ;;  %v997_v20 = vpop.f32.mrf.mxu1  ;;  %v947_v21 = vadd.f32 %v946_v55, %v3667_v57 }
 0x11c   : > { %v971_v26 = vpop.f32.mrf.mxu2  ;;  %1824 = vmatpush.bf16.msrb.mxu3 %v2954_v41 }
 0x11d   : > { %v972_v30 = vadd.f32 %v971_v26, %v3667_v57  ;;  %v1020_v31 = vpop.f32.mrf.mxu3  ;;  %v2946_v26 = vld [vmem:[#allocation8 + $0xa8] sm:$0xff] }
 0x11e   : > { %1775 = vmatpush.bf16.msrb.mxu2 %v2946_v26 }
 0x11f   : > { %v1021_v32 = vadd.f32 %v1020_v31, %v972_v30  ;;  %v996_v30 = vadd.f32 %v995_v5, %v947_v21  ;;  %v998_v31 = vadd.f32 %v997_v20, %v949_v22  ;;  %v951_v33 = vpop.f32.mrf.mxu0  ;;  %v2944_v20 = vld [vmem:[#allocation8 + $0x98] sm:$0xff] }
 0x120   : > { %v952_v50 = vadd.f32 %v951_v33, %v3667_v57  ;;  %1825 = vmatpush.bf16.msrb.mxu3 %v2953_v9 }
 0x121   : > { %v1375_v51 = vmax.f32 %v1021_v32, 0.0  ;;  %v1335_v34 = vmax.f32 %v996_v30, 0.0  ;;  %v1339_v35 = vmax.f32 %v998_v31, 0.0 }
 0x122   : > { %1776 = vmatpush.bf16.msrb.mxu2 %v2945_v58 }
 0x124   : > { %v973_v42 = vpop.f32.mrf.mxu2 }
 0x125   : > { %v974_v44 = vadd.f32 %v973_v42, %v3667_v57  ;;  %v1022_v45 = vpop.f32.mrf.mxu3  ;;  %v1000_v42 = vpop.f32.mrf.mxu1 }
 0x126   : > { %1777 = vmatpush.bf16.msrb.mxu2 %v2944_v20  ;;  %v2949_v20 = vld [vmem:[#allocation8 + $0xc0] sm:$0xff] }
 0x127   : > { %v1023_v46 = vadd.f32 %v1022_v45, %v974_v44  ;;  %v1391_v45 = vpack.c.bf16 %v1339_v35, %v1335_v34  ;;  %v953_v47 = vpop.f32.mrf.mxu0 }
 0x129   : > { %v1379_v54 = vmax.f32 %v1023_v46, 0.0  ;;  %1229 = vmatmul.bf16.vlgmr.msra.gmra.mxu2 %v3576_v0  ;;  %1683 = vmatmul.bf16.vlgmr.msra.gmra.mxu0 %v1383_v43 }
 0x12a   : > { %1278 = vmatmul.bf16.vlgmr.msra.gmra.mxu3 %v3582_v7 }
 0x12b   : > { %v3705_v60 = vpack.c.bf16 %v1379_v54, %v1375_v51  ;;  %v954_v51 = vadd.f32 %v953_v47, %v3667_v57 }
 0x12c   : > { %v1034_v61 = vpop.f32.mrf.mxu2 }
 0x12d   : > { %v1083_v3 = vpop.f32.mrf.mxu3  ;;  %v1035_v0 = vadd.f32 %v1034_v61, %v3708_v2  ;;  %v1002_v62 = vpop.f32.mrf.mxu1 }
 0x12e   : > { %v1003_v5 = vadd.f32 %v1002_v62, %v954_v51 }
 0x12f   : > { %v1084_v15 = vadd.f32 %v1083_v3, %v1035_v0  ;;  %v1001_v3 = vadd.f32 %v1000_v42, %v952_v50  ;;  %v3723_v13 = vpop.f32.mrf.mxu0 }
 0x130   : > { %v1347_v0 = vmax.f32 %v1003_v5, 0.0  ;;  %v2950_v5 = vld [vmem:[#allocation8 + $0xc8] sm:$0xff] }
 0x131   : > { %v1320_v23 = vmax.f32 %v1084_v15, 0.0  ;;  %v1343_v8 = vmax.f32 %v1001_v3, 0.0 }
 0x134   : > { %v1036_v7 = vpop.f32.mrf.mxu2 }
 0x135   : > { %v1037_v16 = vadd.f32 %v1036_v7, %v3708_v2  ;;  %v1085_v17 = vpop.f32.mrf.mxu3 }
 0x137   : > { %v1086_v19 = vadd.f32 %v1085_v17, %v1037_v16  ;;  %v1395_v16 = vpack.c.bf16 %v1347_v0, %v1343_v8 }
 0x139   : > { %v1324_v24 = vmax.f32 %v1086_v19, 0.0  ;;  %1234 = vmatmul.bf16.gmra.mxu2 %v3596_v48  ;;  %1688 = vmatmul.bf16.gmra.mxu0 %v1387_v18 }
 0x13a   : > { %1283 = vmatmul.bf16.gmra.mxu3 %v3602_v53 }
 0x13b   : > { %v1384_v27 = vpack.c.bf16 %v1324_v24, %v1320_v23  ;;  %v3728_v23 = vpop.f32.mrf.mxu0 }
 0x13c   : > { %v1039_v29 = vpop.f32.mrf.mxu2 }
 0x13d   : > { %v1088_v32 = vpop.f32.mrf.mxu3  ;;  %1732 = vmatmul.bf16.vlgmr.msra.gmra.mxu1 %v1384_v27  ;;  %v1040_v39 = vadd.f32 %v1039_v29, %v3708_v2  ;;  %v2952_v27 = vld [vmem:[#allocation8 + $0xd8] sm:$0xff] }
 0x13e   : > { %1826 = vmatpush.bf16.msrb.mxu3 %v2952_v27 }
 0x13f   : > { %v1089_v43 = vadd.f32 %v1088_v32, %v1040_v39  ;;  %v3732_v32 = vpop.f32.mrf.mxu1  ;;  %v2943_v39 = vld [vmem:[#allocation8 + $0x90] sm:$0xff] }
 0x140   : > { %1778 = vmatpush.bf16.msrb.mxu2 %v2943_v39 }
 0x141   : > { %v1328_v54 = vmax.f32 %v1089_v43, 0.0 }
 0x144   : > { %v1041_v48 = vpop.f32.mrf.mxu2 }
 0x145   : > { %v1042_v53 = vadd.f32 %v1041_v48, %v3708_v2  ;;  %v1090_v44 = vpop.f32.mrf.mxu3 }
 0x147   : > { %v1091_v46 = vadd.f32 %v1090_v44, %v1042_v53  ;;  %v3739_v43 = vpop.f32.mrf.mxu1 }
 0x149   : > { %v1332_v55 = vmax.f32 %v1091_v46, 0.0  ;;  %1239 = vmatmul.bf16.gmra.mxu2 %v3616_v36  ;;  %1693 = vmatmul.bf16.gmra.mxu0 %v1391_v45  ;;  %v2951_v45 = vld [vmem:[#allocation8 + $0xd0] sm:$0xff] }
 0x14a   : > { %1288 = vmatmul.bf16.gmra.mxu3 %v3622_v40 }
 0x14b   : > { %v1388_v61 = vpack.c.bf16 %v1332_v55, %v1328_v54  ;;  %1827 = vmatpush.bf16.msrb.mxu3 %v2951_v45  ;;  %v2942_v55 = vld [vmem:[#allocation8 + $0x88] sm:$0xff] }
 0x14c   : > { %v1044_v63 = vpop.f32.mrf.mxu2  ;;  %1779 = vmatpush.bf16.msrb.mxu2 %v2942_v55 }
 0x14d   : > { %v1093_v6 = vpop.f32.mrf.mxu3  ;;  %1737 = vmatmul.bf16.gmra.mxu1 %v1388_v61  ;;  %v1045_v57 = vadd.f32 %v1044_v63, %v3708_v2 }
 0x14f   : > { %v1094_v7 = vadd.f32 %v1093_v6, %v1045_v57  ;;  %v3747_v54 = vpop.f32.mrf.mxu1  ;;  %1828 = vmatpush.bf16.msrb.mxu3 %v2950_v5  ;;  %v2941_v57 = vld [vmem:[#allocation8 + $0x80] sm:$0xff] }
 0x150   : > { %1780 = vmatpush.bf16.msrb.mxu2 %v2941_v57 }
 0x151   : > { %v1336_v18 = vmax.f32 %v1094_v7, 0.0 }
 0x153   : > { %1829 = vmatpush.bf16.msrb.mxu3 %v2949_v20 }
 0x154   : > { %v1046_v36 = vpop.f32.mrf.mxu2 }
 0x155   : > { %v1047_v40 = vadd.f32 %v1046_v36, %v3708_v2  ;;  %v1095_v15 = vpop.f32.mrf.mxu3 }
 0x157   : > { %v1096_v17 = vadd.f32 %v1095_v15, %v1047_v40  ;;  %v1188_v6 = vpop.f32.mrf.mxu1 }
 0x159   : > { %v1340_v19 = vmax.f32 %v1096_v17, 0.0  ;;  %1244 = vmatmul.bf16.gmra.mxu2 %v3636_v10  ;;  %1698 = vmatmul.bf16.gmra.mxu0 %v1395_v16 }
 0x15a   : > { %1293 = vmatmul.bf16.gmra.mxu3 %v3642_v14  ;;  %v3734_v14 = vpop.f32.mrf.mxu0 }
 0x15b   : > { %v1392_v21 = vpack.c.bf16 %v1340_v19, %v1336_v18 }
 0x15c   : > { %v1049_v22 = vpop.f32.mrf.mxu2 }
 0x15d   : > { %v1098_v24 = vpop.f32.mrf.mxu3  ;;  %1742 = vmatmul.bf16.gmra.mxu1 %v1392_v21  ;;  %v1050_v26 = vadd.f32 %v1049_v22, %v3708_v2  ;;  %v3765_v22 = vperm.slane %v3664_v56, 2 }
 0x15f   : > { %v1099_v30 = vadd.f32 %v1098_v24, %v1050_v26  ;;  %v3761_v18 = vpop.f32.mrf.mxu1  ;;  %v1133_v26 = vadd.f32 %v3723_v13, %v3765_v22  ;;  %v1135_v27 = vadd.f32 %v3728_v23, %v3765_v22 }
 0x161   : > { %v1344_v34 = vmax.f32 %v1099_v30, 0.0  ;;  %v1184_v13 = vadd.f32 %v3739_v43, %v1135_v27 }
 0x162   : > { %v3741_v53 = vpop.f32.mrf.mxu0 }
 0x163   : > { %v1140_v43 = vadd.f32 %v3741_v53, %v3765_v22 }
 0x164   : > { %v1051_v29 = vpop.f32.mrf.mxu2 }
 0x165   : > { %v1052_v31 = vadd.f32 %v1051_v29, %v3708_v2  ;;  %v1100_v10 = vpop.f32.mrf.mxu3 }
 0x167   : > { %v1101_v33 = vadd.f32 %v1100_v10, %v1052_v31  ;;  %v1193_v30 = vpop.f32.mrf.mxu1 }
 0x169   : > { %v1348_v35 = vmax.f32 %v1101_v33, 0.0  ;;  %1249 = vmatmul.bf16.gmra.mxu2 %v3578_v1  ;;  %1703 = vmatmul.bf16.gmra.mxu0 %v3679_v28 }
 0x16a   : > { %1298 = vmatmul.bf16.gmra.mxu3 %v3580_v4  ;;  %v3750_v58 = vpop.f32.mrf.mxu0 }
 0x16b   : > { %v1396_v41 = vpack.c.bf16 %v1348_v35, %v1344_v34  ;;  %v1182_v35 = vadd.f32 %v3732_v32, %v1133_v26  ;;  %v1138_v32 = vadd.f32 %v3734_v14, %v3765_v22 }
 0x16c   : > { %v1054_v42 = vpop.f32.mrf.mxu2 }
 0x16d   : > { %v1103_v48 = vpop.f32.mrf.mxu3  ;;  %1747 = vmatmul.bf16.gmra.mxu1 %v1396_v41  ;;  %v1055_v44 = vadd.f32 %v1054_v42, %v3708_v2  ;;  %v1321_v23 = vmax.f32 %v1182_v35, 0.0  ;;  %v1325_v41 = vmax.f32 %v1184_v13, 0.0 }
 0x16f   : > { %v1104_v1 = vadd.f32 %v1103_v48, %v1055_v44  ;;  %v3780_v48 = vpop.f32.mrf.mxu1 }
 0x171   : > { %v1352_v50 = vmax.f32 %v1104_v1, 0.0 }
 0x172   : > { %v3753_v8 = vpop.f32.mrf.mxu0 }
 0x174   : > { %v1056_v46 = vpop.f32.mrf.mxu2 }
 0x175   : > { %v1057_v28 = vadd.f32 %v1056_v46, %v3708_v2  ;;  %v1105_v47 = vpop.f32.mrf.mxu3 }
 0x177   : > { %v1106_v4 = vadd.f32 %v1105_v47, %v1057_v28  ;;  %v1198_v55 = vpop.f32.mrf.mxu1 }
 0x179   : > { %v1356_v51 = vmax.f32 %v1106_v4, 0.0  ;;  %1254 = vmatmul.bf16.gmra.mxu2 %v3598_v49  ;;  %1708 = vmatmul.bf16.gmra.mxu0 %v3687_v59 }
 0x17a   : > { %1303 = vmatmul.bf16.gmra.mxu3 %v3600_v52  ;;  %v3759_v17 = vpop.f32.mrf.mxu0 }
 0x17b   : > { %v1400_v61 = vpack.c.bf16 %v1356_v51, %v1352_v50  ;;  %v1187_v50 = vadd.f32 %v3747_v54, %v1138_v32  ;;  %v1189_v51 = vadd.f32 %v1188_v6, %v1140_v43  ;;  %v1143_v6 = vadd.f32 %v3750_v58, %v3765_v22 }
 0x17c   : > { %v1059_v62 = vpop.f32.mrf.mxu2 }
 0x17d   : > { %v1108_v63 = vpop.f32.mrf.mxu3  ;;  %1752 = vmatmul.bf16.gmra.mxu1 %v1400_v61  ;;  %v1060_v3 = vadd.f32 %v1059_v62, %v3708_v2  ;;  %v3789_v61 = vperm.slane %v3664_v56, 3  ;;  %v1329_v62 = vmax.f32 %v1187_v50, 0.0  ;;  %v1145_v56 = vadd.f32 %v3753_v8, %v3765_v22 }
 0x17f   : > { %v1109_v59 = vadd.f32 %v1108_v63, %v1060_v3  ;;  %v1333_v63 = vmax.f32 %v1189_v51, 0.0  ;;  %v2964_v3 = vld [vmem:[#allocation10 + $0x38] sm:$0xff]  ;;  %v1201_v26 = vpop.f32.mrf.mxu1 }
 0x180   : > { %1963 = vmatpush.bf16.msrb.mxu0 %v2964_v3 }
 0x181   : > { %v1360_v36 = vmax.f32 %v1109_v59, 0.0 }
 0x182   : > { %v3772_v29 = vpop.f32.mrf.mxu0 }
 0x184   : > { %v1061_v49 = vpop.f32.mrf.mxu2 }
 0x185   : > { %v1062_v0 = vadd.f32 %v1061_v49, %v3708_v2  ;;  %v1110_v52 = vpop.f32.mrf.mxu3 }
 0x187   : > { %v1111_v9 = vadd.f32 %v1110_v52, %v1062_v0  ;;  %v1389_v0 = vpack.c.bf16 %v1333_v63, %v1329_v62 }
 0x189   : > { %v1364_v7 = vmax.f32 %v1111_v9, 0.0  ;;  %1259 = vmatmul.bf16.gmra.mxu2 %v3618_v37  ;;  %1713 = vmatmul.bf16.gmra.mxu0 %v3697_v25 }
 0x18a   : > { %1308 = vmatmul.bf16.gmra.mxu3 %v3620_v38 }
 0x18b   : > { %v1404_v40 = vpack.c.bf16 %v1364_v7, %v1360_v36  ;;  %v1192_v7 = vadd.f32 %v3761_v18, %v1143_v6  ;;  %v1148_v18 = vadd.f32 %v3759_v17, %v3765_v22  ;;  %v2962_v17 = vld [vmem:[#allocation10 + $0x28] sm:$0xff] }
 0x18c   : > { %v1064_v15 = vpop.f32.mrf.mxu2 }
 0x18d   : > { %v1113_v16 = vpop.f32.mrf.mxu3  ;;  %1757 = vmatmul.bf16.gmra.mxu1 %v1404_v40  ;;  %v1065_v19 = vadd.f32 %v1064_v15, %v3708_v2  ;;  %v1194_v40 = vadd.f32 %v1193_v30, %v1145_v56  ;;  %v1150_v30 = vadd.f32 %v3772_v29, %v3765_v22  ;;  %v1197_v13 = vadd.f32 %v3780_v48, %v1148_v18 }
 0x18f   : > { %v1114_v37 = vadd.f32 %v1113_v16, %v1065_v19  ;;  %v1337_v16 = vmax.f32 %v1192_v7, 0.0  ;;  %v1341_v19 = vmax.f32 %v1194_v40, 0.0 }
 0x191   : > { %v1368_v31 = vmax.f32 %v1114_v37, 0.0  ;;  %v1152_v37 = vpop.f32.mrf.mxu0 }
 0x192   : > { %v1153_v48 = vadd.f32 %v1152_v37, %v3765_v22 }
 0x194   : > { %v1066_v21 = vpop.f32.mrf.mxu2 }
 0x195   : > { %v1067_v25 = vadd.f32 %v1066_v21, %v3708_v2  ;;  %v1115_v38 = vpop.f32.mrf.mxu3  ;;  %v2963_v21 = vld [vmem:[#allocation10 + $0x30] sm:$0xff] }
 0x196   : > { %1964 = vmatpush.bf16.msrb.mxu0 %v2963_v21 }
 0x197   : > { %v1116_v24 = vadd.f32 %v1115_v38, %v1067_v25 }
 0x199   : > { %v1372_v10 = vmax.f32 %v1116_v24, 0.0  ;;  %1264 = vmatmul.bf16.gmra.mxu2 %v3638_v11  ;;  %1718 = vmatmul.bf16.gmra.mxu0 %v3705_v60  ;;  %v1385_v11 = vpack.c.bf16 %v1325_v41, %v1321_v23  ;;  %v1393_v24 = vpack.c.bf16 %v1341_v19, %v1337_v16  ;;  %v1203_v41 = vpop.f32.mrf.mxu1 }
 0x19a   : > { %1313 = vmatmul.bf16.gmra.mxu3 %v3640_v12  ;;  %1965 = vmatpush.bf16.msrb.mxu0 %v2962_v17 }
 0x19b   : > { %v1408_v33 = vpack.c.bf16 %v1372_v10, %v1368_v31 }
 0x19c   : > { %v1069_v34 = vpop.f32.mrf.mxu2 }
 0x19d   : > { %v1118_v39 = vpop.f32.mrf.mxu3  ;;  %1762 = vmatmul.bf16.gmra.mxu1 %v1408_v33  ;;  %v1070_v42 = vadd.f32 %v1069_v34, %v3708_v2  ;;  %v1154_v34 = vpop.f32.mrf.mxu0 }
 0x19f   : > { %v1119_v45 = vadd.f32 %v1118_v39, %v1070_v42  ;;  %v1199_v39 = vadd.f32 %v1198_v55, %v1150_v30  ;;  %v1345_v42 = vmax.f32 %v1197_v13, 0.0  ;;  %v1202_v55 = vadd.f32 %v1201_v26, %v1153_v48 }
 0x1a1   : > { %v1376_v1 = vmax.f32 %v1119_v45, 0.0 }
 0x1a4   : > { %v1071_v44 = vpop.f32.mrf.mxu2 }
 0x1a5   : > { %v1072_v60 = vadd.f32 %v1071_v44, %v3708_v2  ;;  %v1120_v12 = vpop.f32.mrf.mxu3  ;;  %v1349_v44 = vmax.f32 %v1199_v39, 0.0  ;;  %v1157_v32 = vpop.f32.mrf.mxu0 }
 0x1a7   : > { %v1121_v46 = vadd.f32 %v1120_v12, %v1072_v60 }
 0x1a9   : > { %v1380_v28 = vmax.f32 %v1121_v46, 0.0  ;;  %1781 = vmatmul.bf16.vlgmr.msrb.gmra.mxu2 %v1385_v11  ;;  %v1397_v46 = vpack.c.bf16 %v1349_v44, %v1345_v42 }
 0x1ab   : > { %v1412_v47 = vpack.c.bf16 %v1380_v28, %v1376_v1  ;;  %v1155_v1 = vadd.f32 %v1154_v34, %v3765_v22 }
 0x1ac   : > { %v1230_v4 = vpop.f32.mrf.mxu2 }
 0x1ad   : > { %v1279_v2 = vpop.f32.mrf.mxu3  ;;  %1767 = vmatmul.bf16.gmra.mxu1 %v1412_v47  ;;  %v1231_v14 = vadd.f32 %v1230_v4, %v3789_v61  ;;  %v1206_v4 = vpop.f32.mrf.mxu1 }
 0x1ae   : > { %v1159_v63 = vpop.f32.mrf.mxu0 }
 0x1af   : > { %v1280_v5 = vadd.f32 %v1279_v2, %v1231_v14  ;;  %v1204_v2 = vadd.f32 %v1203_v41, %v1155_v1  ;;  %v1353_v14 = vmax.f32 %v1202_v55, 0.0 }
 0x1b1   : > { %v1322_v52 = vmax.f32 %v1280_v5, 0.0  ;;  %v1357_v3 = vmax.f32 %v1204_v2, 0.0  ;;  %v2961_v5 = vld [vmem:[#allocation10 + $0x20] sm:$0xff] }
 0x1b2   : > { %1966 = vmatpush.bf16.msrb.mxu0 %v2961_v5 }
 0x1b3   : > { %v1401_v56 = vpack.c.bf16 %v1357_v3, %v1353_v14 }
 0x1b4   : > { %v1232_v53 = vpop.f32.mrf.mxu2 }
 0x1b5   : > { %v1233_v49 = vadd.f32 %v1232_v53, %v3789_v61  ;;  %v1281_v59 = vpop.f32.mrf.mxu3 }
 0x1b6   : > { %v1162_v40 = vpop.f32.mrf.mxu0 }
 0x1b7   : > { %v1282_v54 = vadd.f32 %v1281_v59, %v1233_v49  ;;  %v1208_v49 = vpop.f32.mrf.mxu1  ;;  %v1163_v34 = vadd.f32 %v1162_v40, %v3765_v22 }
 0x1b9   : > { %v1326_v57 = vmax.f32 %v1282_v54, 0.0  ;;  %1786 = vmatmul.bf16.gmra.mxu2 %v1389_v0 }
 0x1bb   : > { %v1386_v9 = vpack.c.bf16 %v1326_v57, %v1322_v52  ;;  %v1158_v57 = vadd.f32 %v1157_v32, %v3765_v22 }
 0x1bc   : > { %v1235_v36 = vpop.f32.mrf.mxu2 }
 0x1bd   : > { %v1284_v15 = vpop.f32.mrf.mxu3  ;;  %1830 = vmatmul.bf16.vlgmr.msrb.gmra.mxu3 %v1386_v9  ;;  %v1236_v20 = vadd.f32 %v1235_v36, %v3789_v61  ;;  %v1160_v9 = vadd.f32 %v1159_v63, %v3765_v22  ;;  %v1207_v19 = vadd.f32 %v1206_v4, %v1158_v57 }
 0x1bf   : > { %v1285_v25 = vadd.f32 %v1284_v15, %v1236_v20  ;;  %v1209_v20 = vadd.f32 %v1208_v49, %v1160_v9  ;;  %v1211_v37 = vpop.f32.mrf.mxu1  ;;  %v2958_v49 = vld [vmem:[#allocation10 + $0x8] sm:$0xff] }
 0x1c0   : > { %v1212_v42 = vadd.f32 %v1211_v37, %v1163_v34 }
 0x1c1   : > { %v1330_v31 = vmax.f32 %v1285_v25, 0.0  ;;  %v1365_v25 = vmax.f32 %v1209_v20, 0.0 }
 0x1c4   : > { %v1237_v58 = vpop.f32.mrf.mxu2 }
 0x1c5   : > { %v1238_v8 = vadd.f32 %v1237_v58, %v3789_v61  ;;  %v1286_v38 = vpop.f32.mrf.mxu3  ;;  %v1361_v58 = vmax.f32 %v1207_v19, 0.0 }
 0x1c7   : > { %v1287_v27 = vadd.f32 %v1286_v38, %v1238_v8  ;;  %v2960_v38 = vld [vmem:[#allocation10 + $0x18] sm:$0xff] }
 0x1c8   : > { %1967 = vmatpush.bf16.msrb.mxu0 %v2960_v38 }
 0x1c9   : > { %v1334_v10 = vmax.f32 %v1287_v27, 0.0  ;;  %1791 = vmatmul.bf16.gmra.mxu2 %v1393_v24  ;;  %v1164_v24 = vpop.f32.mrf.mxu0 }
 0x1cb   : > { %v1390_v33 = vpack.c.bf16 %v1334_v10, %v1330_v31  ;;  %v1405_v31 = vpack.c.bf16 %v1365_v25, %v1361_v58 }
 0x1cc   : > { %v1240_v35 = vpop.f32.mrf.mxu2 }
 0x1cd   : > { %v1289_v23 = vpop.f32.mrf.mxu3  ;;  %1835 = vmatmul.bf16.gmra.mxu3 %v1390_v33  ;;  %v1241_v11 = vadd.f32 %v1240_v35, %v3789_v61  ;;  %v1213_v33 = vpop.f32.mrf.mxu1  ;;  %v1165_v35 = vadd.f32 %v1164_v24, %v3765_v22 }
 0x1cf   : > { %v1290_v29 = vadd.f32 %v1289_v23, %v1241_v11  ;;  %v1214_v44 = vadd.f32 %v1213_v33, %v1165_v35 }
 0x1d1   : > { %v1338_v28 = vmax.f32 %v1290_v29, 0.0  ;;  %v1167_v17 = vpop.f32.mrf.mxu0  ;;  %v1373_v29 = vmax.f32 %v1214_v44, 0.0 }
 0x1d4   : > { %v1242_v45 = vpop.f32.mrf.mxu2 }
 0x1d5   : > { %v1243_v60 = vadd.f32 %v1242_v45, %v3789_v61  ;;  %v1291_v12 = vpop.f32.mrf.mxu3  ;;  %v1369_v45 = vmax.f32 %v1212_v42, 0.0 }
 0x1d7   : > { %v1292_v43 = vadd.f32 %v1291_v12, %v1243_v60  ;;  %v2959_v12 = vld [vmem:[#allocation10 + $0x10] sm:$0xff] }
 0x1d8   : > { %1968 = vmatpush.bf16.msrb.mxu0 %v2959_v12 }
 0x1d9   : > { %v1342_v47 = vmax.f32 %v1292_v43, 0.0  ;;  %1796 = vmatmul.bf16.gmra.mxu2 %v1397_v46  ;;  %v1216_v46 = vpop.f32.mrf.mxu1  ;;  %v1169_v4 = vpop.f32.mrf.mxu0 }
 0x1db   : > { %v1394_v50 = vpack.c.bf16 %v1342_v47, %v1338_v28  ;;  %v1409_v28 = vpack.c.bf16 %v1373_v29, %v1369_v45 }
 0x1dc   : > { %v1245_v51 = vpop.f32.mrf.mxu2  ;;  %1969 = vmatpush.bf16.msrb.mxu0 %v2958_v49 }
 0x1dd   : > { %v1294_v62 = vpop.f32.mrf.mxu3  ;;  %1840 = vmatmul.bf16.gmra.mxu3 %v1394_v50  ;;  %v1246_v53 = vadd.f32 %v1245_v51, %v3789_v61  ;;  %v1168_v50 = vadd.f32 %v1167_v17, %v3765_v22  ;;  %v1170_v51 = vadd.f32 %v1169_v4, %v3765_v22 }
 0x1df   : > { %v1295_v0 = vadd.f32 %v1294_v62, %v1246_v53  ;;  %v1217_v3 = vadd.f32 %v1216_v46, %v1168_v50 }
 0x1e1   : > { %v1346_v36 = vmax.f32 %v1295_v0, 0.0  ;;  %v1218_v63 = vpop.f32.mrf.mxu1  ;;  %v1684_v40 = vpop.f32.mrf.mxu0 }
 0x1e2   : > { %v1219_v53 = vadd.f32 %v1218_v63, %v1170_v51 }
 0x1e4   : > { %v1247_v59 = vpop.f32.mrf.mxu2  ;;  %v1381_v0 = vmax.f32 %v1219_v53, 0.0 }
 0x1e5   : > { %v1248_v54 = vadd.f32 %v1247_v59, %v3789_v61  ;;  %v1296_v6 = vpop.f32.mrf.mxu3  ;;  %v1377_v59 = vmax.f32 %v1217_v3, 0.0 }
 0x1e7   : > { %v1297_v52 = vadd.f32 %v1296_v6, %v1248_v54  ;;  %v1413_v57 = vpack.c.bf16 %v1381_v0, %v1377_v59 }
 0x1e9   : > { %v1350_v7 = vmax.f32 %v1297_v52, 0.0  ;;  %1801 = vmatmul.bf16.gmra.mxu2 %v1401_v56  ;;  %v1686_v58 = vpop.f32.mrf.mxu0 }
 0x1eb   : > { %v1398_v15 = vpack.c.bf16 %v1350_v7, %v1346_v36 }
 0x1ec   : > { %v1250_v16 = vpop.f32.mrf.mxu2 }
 0x1ed   : > { %v1299_v21 = vpop.f32.mrf.mxu3  ;;  %1845 = vmatmul.bf16.gmra.mxu3 %v1398_v15  ;;  %v1251_v8 = vadd.f32 %v1250_v16, %v3789_v61  ;;  %v1733_v16 = vpop.f32.mrf.mxu1 }
 0x1ef   : > { %v1300_v27 = vadd.f32 %v1299_v21, %v1251_v8  ;;  %v2957_v21 = vld [vmem:[#allocation10] sm:$0xff] }
 0x1f0   : > { %1970 = vmatpush.bf16.msrb.mxu0 %v2957_v21 }
 0x1f1   : > { %v1354_v13 = vmax.f32 %v1300_v27, 0.0  ;;  %v1689_v33 = vpop.f32.mrf.mxu0 }
 0x1f4   : > { %v1252_v26 = vpop.f32.mrf.mxu2 }
 0x1f5   : > { %v1253_v18 = vadd.f32 %v1252_v26, %v3789_v61  ;;  %v1301_v30 = vpop.f32.mrf.mxu3  ;;  %v1735_v24 = vpop.f32.mrf.mxu1 }
 0x1f7   : > { %v1302_v10 = vadd.f32 %v1301_v30, %v1253_v18 }
 0x1f9   : > { %v1358_v39 = vmax.f32 %v1302_v10, 0.0  ;;  %1806 = vmatmul.bf16.gmra.mxu2 %v1405_v31 }
 0x1fb   : > { %v1402_v23 = vpack.c.bf16 %v1358_v39, %v1354_v13  ;;  %v1691_v13 = vpop.f32.mrf.mxu0 }
 0x1fc   : > { %v1255_v41 = vpop.f32.mrf.mxu2 }
 0x1fd   : > { %v1304_v11 = vpop.f32.mrf.mxu3  ;;  %1850 = vmatmul.bf16.gmra.mxu3 %v1402_v23  ;;  %v1256_v60 = vadd.f32 %v1255_v41, %v3789_v61  ;;  %v1738_v34 = vpop.f32.mrf.mxu1  ;;  %v3828_v23 = vld [vmem:[%s3910_s4] ss:$0 sm:$0xff] }
 0x1fe   : > { %v1685_v42 = vadd.f32 %v3828_v23, %v1684_v40 }
 0x1ff   : > { %v1305_v43 = vadd.f32 %v1304_v11, %v1256_v60  ;;  %v1687_v11 = vadd.f32 %v3828_v23, %v1686_v58 }
 0x200   : > { %v1734_v45 = vadd.f32 %v1733_v16, %v1685_v42 }
 0x201   : > { %v1362_v55 = vmax.f32 %v1305_v43, 0.0  ;;  %v1736_v12 = vadd.f32 %v1735_v24, %v1687_v11 }
 0x203   : > { %v1694_v17 = vpop.f32.mrf.mxu0 }
 0x204   : > { %v1257_v32 = vpop.f32.mrf.mxu2  ;;  %v1695_v40 = vadd.f32 %v3828_v23, %v1694_v17 }
 0x205   : > { %v1258_v48 = vadd.f32 %v1257_v32, %v3789_v61  ;;  %v1306_v1 = vpop.f32.mrf.mxu3  ;;  %v1740_v39 = vpop.f32.mrf.mxu1 }
 0x207   : > { %v1307_v47 = vadd.f32 %v1306_v1, %v1258_v48 }
 0x209   : > { %v1366_v2 = vmax.f32 %v1307_v47, 0.0  ;;  %1811 = vmatmul.bf16.gmra.mxu2 %v1409_v28 }
 0x20b   : > { %v1406_v62 = vpack.c.bf16 %v1366_v2, %v1362_v55  ;;  %v1696_v4 = vpop.f32.mrf.mxu0  ;;  %v2971_v55 = vld [vmem:[#allocation11 + $0x30] sm:$0xff] }
 0x20c   : > { %v1260_v14 = vpop.f32.mrf.mxu2 }
 0x20d   : > { %v1309_v5 = vpop.f32.mrf.mxu3  ;;  %1855 = vmatmul.bf16.gmra.mxu3 %v1406_v62  ;;  %v1261_v54 = vadd.f32 %v1260_v14, %v3789_v61  ;;  %v1743_v29 = vpop.f32.mrf.mxu1  ;;  %v1690_v62 = vadd.f32 %v3828_v23, %v1689_v33  ;;  %v1692_v14 = vadd.f32 %v3828_v23, %v1691_v13  ;;  %v2969_v33 = vld [vmem:[#allocation11 + $0x20] sm:$0xff] }
 0x20e   : > { %v1744_v21 = vadd.f32 %v1743_v29, %v1695_v40 }
 0x20f   : > { %v1310_v56 = vadd.f32 %v1309_v5, %v1261_v54  ;;  %v1739_v3 = vadd.f32 %v1738_v34, %v1690_v62  ;;  %v1741_v5 = vadd.f32 %v1740_v39, %v1692_v14 }
 0x211   : > { %v1370_v36 = vmax.f32 %v1310_v56, 0.0 }
 0x213   : > { %v1699_v59 = vpop.f32.mrf.mxu0 }
 0x214   : > { %v1262_v6 = vpop.f32.mrf.mxu2 }
 0x215   : > { %v1263_v22 = vadd.f32 %v1262_v6, %v3789_v61  ;;  %v1311_v52 = vpop.f32.mrf.mxu3  ;;  %v1745_v2 = vpop.f32.mrf.mxu1 }
 0x217   : > { %v1312_v9 = vadd.f32 %v1311_v52, %v1263_v22 }
 0x219   : > { %v1374_v7 = vmax.f32 %v1312_v9, 0.0  ;;  %1816 = vmatmul.bf16.gmra.mxu2 %v1413_v57 }
 0x21b   : > { %v1410_v15 = vpack.c.bf16 %v1374_v7, %v1370_v36  ;;  %v2970_v7 = vld [vmem:[#allocation11 + $0x28] sm:$0xff] }
 0x21c   : > { %v1265_v19 = vpop.f32.mrf.mxu2 }
 0x21d   : > { %v1314_v20 = vpop.f32.mrf.mxu3  ;;  %1860 = vmatmul.bf16.gmra.mxu3 %v1410_v15  ;;  %v1266_v37 = vadd.f32 %v1265_v19, %v3789_v61  ;;  %v1748_v6 = vpop.f32.mrf.mxu1  ;;  %v1697_v19 = vadd.f32 %v3828_v23, %v1696_v4 }
 0x21e   : > { %v1701_v15 = vpop.f32.mrf.mxu0 }
 0x21f   : > { %v1315_v8 = vadd.f32 %v1314_v20, %v1266_v37  ;;  %v1746_v58 = vadd.f32 %v1745_v2, %v1697_v19  ;;  %v1702_v39 = vadd.f32 %v3828_v23, %v1701_v15 }
 0x221   : > { %v1378_v18 = vmax.f32 %v1315_v8, 0.0 }
 0x224   : > { %v1267_v25 = vpop.f32.mrf.mxu2 }
 0x225   : > { %v1268_v38 = vadd.f32 %v1267_v25, %v3789_v61  ;;  %v1316_v26 = vpop.f32.mrf.mxu3  ;;  %v2972_v61 = vld [vmem:[#allocation11 + $0x38] sm:$0xff]  ;;  %v1750_v20 = vpop.f32.mrf.mxu1 }
 0x226   : > { %2104 = vmatpush.bf16.msrb.mxu1 %v2972_v61  ;;  %v1751_v42 = vadd.f32 %v1750_v20, %v1702_v39 }
 0x227   : > { %v1317_v27 = vadd.f32 %v1316_v26, %v1268_v38 }
 0x229   : > { %v1382_v30 = vmax.f32 %v1317_v27, 0.0  ;;  %v1704_v27 = vpop.f32.mrf.mxu0 }
 0x22a   : > { %2105 = vmatpush.bf16.msrb.mxu1 %v2971_v55  ;;  %v1705_v4 = vadd.f32 %v3828_v23, %v1704_v27  ;;  %v2965_v27 = vld [vmem:[#allocation11] sm:$0xff] }
 0x22b   : > { %v1414_v31 = vpack.c.bf16 %v1382_v30, %v1378_v18 }
 0x22c   : > { %v1782_v10 = vpop.f32.mrf.mxu2 }
 0x22d   : > { %1865 = vmatmul.bf16.gmra.mxu3 %v1414_v31  ;;  %v1783_v46 = vadd.f32 %v1782_v10, %v1734_v45  ;;  %v1753_v31 = vpop.f32.mrf.mxu1 }
 0x22e   : > { %2106 = vmatpush.bf16.msrb.mxu1 %v2970_v7  ;;  %v1754_v55 = vadd.f32 %v1753_v31, %v1705_v4 }
 0x231   : > { %v1706_v61 = vpop.f32.mrf.mxu0 }
 0x232   : > { %2107 = vmatpush.bf16.msrb.mxu1 %v2969_v33 }
 0x234   : > { %v1784_v35 = vpop.f32.mrf.mxu2 }
 0x235   : > { %v1785_v32 = vadd.f32 %v1784_v35, %v1736_v12  ;;  %v1700_v35 = vadd.f32 %v3828_v23, %v1699_v59  ;;  %v1755_v11 = vpop.f32.mrf.mxu1 }
 0x23c   : > { %v1787_v41 = vpop.f32.mrf.mxu2 }
 0x23d   : > { %v1788_v49 = vadd.f32 %v1787_v41, %v1739_v3  ;;  %v1749_v41 = vadd.f32 %v1748_v6, %v1700_v35 }
 0x240   : > { %v1831_v44 = vpop.f32.mrf.mxu3 }
 0x241   : > { %v1832_v43 = vadd.f32 %v1831_v44, %v1783_v46 }
 0x243   : > { %v1871_v28 = vmax.f32 %v1832_v43, 0.0 }
 0x244   : > { %v1789_v60 = vpop.f32.mrf.mxu2 }
 0x245   : > { %v1790_v0 = vadd.f32 %v1789_v60, %v1741_v5 }
 0x248   : > { %v1833_v48 = vpop.f32.mrf.mxu3 }
 0x249   : > { %v1834_v1 = vadd.f32 %v1833_v48, %v1785_v32  ;;  %v2968_v48 = vld [vmem:[#allocation11 + $0x18] sm:$0xff] }
 0x24a   : > { %2108 = vmatpush.bf16.msrb.mxu1 %v2968_v48 }
 0x24b   : > { %v1872_v47 = vmax.f32 %v1834_v1, 0.0  ;;  %v1709_v1 = vpop.f32.mrf.mxu0 }
 0x24c   : > { %v1792_v50 = vpop.f32.mrf.mxu2 }
 0x24d   : > { %v1887_v51 = vpack.c.bf16 %v1872_v47, %v1871_v28  ;;  %v1793_v25 = vadd.f32 %v1792_v50, %v1744_v21  ;;  %v1758_v28 = vpop.f32.mrf.mxu1 }
 0x24f   : > { %1971 = vmatmul.bf16.vlgmr.msrb.gmra.mxu0 %v1887_v51  ;;  %v1707_v51 = vadd.f32 %v3828_v23, %v1706_v61 }
 0x250   : > { %v1836_v63 = vpop.f32.mrf.mxu3 }
 0x251   : > { %v1837_v54 = vadd.f32 %v1836_v63, %v1788_v49  ;;  %v1756_v2 = vadd.f32 %v1755_v11, %v1707_v51 }
 0x253   : > { %v1873_v52 = vmax.f32 %v1837_v54, 0.0  ;;  %v1711_v3 = vpop.f32.mrf.mxu0 }
 0x254   : > { %v1794_v53 = vpop.f32.mrf.mxu2 }
 0x255   : > { %v1795_v8 = vadd.f32 %v1794_v53, %v1746_v58  ;;  %v1760_v49 = vpop.f32.mrf.mxu1 }
 0x258   : > { %v1838_v56 = vpop.f32.mrf.mxu3 }
 0x259   : > { %v1839_v22 = vadd.f32 %v1838_v56, %v1790_v0  ;;  %v2967_v56 = vld [vmem:[#allocation11 + $0x10] sm:$0xff] }
 0x25a   : > { %2109 = vmatpush.bf16.msrb.mxu1 %v2967_v56 }
 0x25b   : > { %v1874_v57 = vmax.f32 %v1839_v22, 0.0 }
 0x25c   : > { %v1797_v9 = vpop.f32.mrf.mxu2 }
 0x25d   : > { %v1888_v36 = vpack.c.bf16 %v1874_v57, %v1873_v52  ;;  %v1798_v44 = vadd.f32 %v1797_v9, %v1749_v41  ;;  %v1710_v52 = vadd.f32 %v3828_v23, %v1709_v1  ;;  %v1714_v57 = vpop.f32.mrf.mxu0  ;;  %v1712_v9 = vadd.f32 %v3828_v23, %v1711_v3  ;;  %v1763_v7 = vpop.f32.mrf.mxu1  ;;  %v3096_v3 = vld [vmem:[%s3912_s6] ss:$0 sm:$0xff] }
 0x25e   : > { %v1715_v31 = vadd.f32 %v3828_v23, %v1714_v57 }
 0x25f   : > { %1976 = vmatmul.bf16.gmra.mxu0 %v1888_v36  ;;  %v1759_v36 = vadd.f32 %v1758_v28, %v1710_v52  ;;  %v1761_v40 = vadd.f32 %v1760_v49, %v1712_v9 }
 0x260   : > { %v1841_v16 = vpop.f32.mrf.mxu3  ;;  %v1764_v33 = vadd.f32 %v1763_v7, %v1715_v31 }
 0x261   : > { %v1842_v38 = vadd.f32 %v1841_v16, %v1793_v25 }
 0x263   : > { %v1875_v18 = vmax.f32 %v1842_v38, 0.0 }
 0x264   : > { %v1799_v37 = vpop.f32.mrf.mxu2 }
 0x265   : > { %v1800_v17 = vadd.f32 %v1799_v37, %v1751_v42 }
 0x268   : > { %v1843_v24 = vpop.f32.mrf.mxu3 }
 0x269   : > { %v1844_v26 = vadd.f32 %v1843_v24, %v1795_v8  ;;  %v1716_v8 = vpop.f32.mrf.mxu0  ;;  %v2966_v24 = vld [vmem:[#allocation11 + $0x8] sm:$0xff] }
 0x26a   : > { %2110 = vmatpush.bf16.msrb.mxu1 %v2966_v24 }
 0x26b   : > { %v1876_v30 = vmax.f32 %v1844_v26, 0.0  ;;  %v1765_v26 = vpop.f32.mrf.mxu1 }
 0x26c   : > { %v1802_v34 = vpop.f32.mrf.mxu2 }
 0x26d   : > { %v1889_v10 = vpack.c.bf16 %v1876_v30, %v1875_v18  ;;  %v1803_v62 = vadd.f32 %v1802_v34, %v1754_v55 }
 0x26e   : > { %2111 = vmatpush.bf16.msrb.mxu1 %v2965_v27 }
 0x26f   : > { %1981 = vmatmul.bf16.gmra.mxu0 %v1889_v10  ;;  %v1717_v10 = vadd.f32 %v3828_v23, %v1716_v8 }
 0x270   : > { %v1846_v13 = vpop.f32.mrf.mxu3 }
 0x271   : > { %v1847_v45 = vadd.f32 %v1846_v13, %v1798_v44  ;;  %v1766_v34 = vadd.f32 %v1765_v26, %v1717_v10  ;;  %v1719_v13 = vpop.f32.mrf.mxu0 }
 0x273   : > { %v1877_v46 = vmax.f32 %v1847_v45, 0.0  ;;  %v1768_v61 = vpop.f32.mrf.mxu1 }
 0x274   : > { %v1804_v29 = vpop.f32.mrf.mxu2 }
 0x275   : > { %v1805_v63 = vadd.f32 %v1804_v29, %v1756_v2 }
 0x278   : > { %v1848_v60 = vpop.f32.mrf.mxu3 }
 0x279   : > { %v1849_v12 = vadd.f32 %v1848_v60, %v1800_v17  ;;  %v1721_v60 = vpop.f32.mrf.mxu0 }
 0x27b   : > { %v1878_v32 = vmax.f32 %v1849_v12, 0.0 }
 0x27c   : > { %v1807_v50 = vpop.f32.mrf.mxu2 }
 0x27d   : > { %v1890_v43 = vpack.c.bf16 %v1878_v32, %v1877_v46  ;;  %v1808_v15 = vadd.f32 %v1807_v50, %v1759_v36  ;;  %v1720_v46 = vadd.f32 %v3828_v23, %v1719_v13  ;;  %v1770_v32 = vpop.f32.mrf.mxu1 }
 0x27f   : > { %1986 = vmatmul.bf16.gmra.mxu0 %v1890_v43  ;;  %v1722_v43 = vadd.f32 %v3828_v23, %v1721_v60  ;;  %v1769_v48 = vadd.f32 %v1768_v61, %v1720_v46 }
 0x280   : > { %v1851_v47 = vpop.f32.mrf.mxu3 }
 0x281   : > { %v1852_v14 = vadd.f32 %v1851_v47, %v1803_v62  ;;  %v1771_v28 = vadd.f32 %v1770_v32, %v1722_v43 }
 0x283   : > { %v1879_v59 = vmax.f32 %v1852_v14, 0.0 }
 0x284   : > { %v1809_v54 = vpop.f32.mrf.mxu2 }
 0x285   : > { %v1810_v19 = vadd.f32 %v1809_v54, %v1761_v40 }
 0x288   : > { %v1853_v53 = vpop.f32.mrf.mxu3 }
 0x289   : > { %v1854_v5 = vadd.f32 %v1853_v53, %v1805_v63 }
 0x28b   : > { %v1880_v0 = vmax.f32 %v1854_v5, 0.0 }
 0x28c   : > { %v1812_v16 = vpop.f32.mrf.mxu2 }
 0x28d   : > { %v1891_v6 = vpack.c.bf16 %v1880_v0, %v1879_v59  ;;  %v1813_v35 = vadd.f32 %v1812_v16, %v1764_v33 }
 0x28f   : > { %1991 = vmatmul.bf16.gmra.mxu0 %v1891_v6 }
 0x290   : > { %v1856_v22 = vpop.f32.mrf.mxu3 }
 0x291   : > { %v1857_v20 = vadd.f32 %v1856_v22, %v1808_v15 }
 0x293   : > { %v1881_v58 = vmax.f32 %v1857_v20, 0.0 }
 0x294   : > { %v1814_v18 = vpop.f32.mrf.mxu2 }
 0x295   : > { %v1815_v39 = vadd.f32 %v1814_v18, %v1766_v34 }
 0x298   : > { %v1858_v21 = vpop.f32.mrf.mxu3 }
 0x299   : > { %v1859_v37 = vadd.f32 %v1858_v21, %v1810_v19 }
 0x29b   : > { %v1882_v25 = vmax.f32 %v1859_v37, 0.0 }
 0x29c   : > { %v1817_v11 = vpop.f32.mrf.mxu2 }
 0x29d   : > { %v1892_v38 = vpack.c.bf16 %v1882_v25, %v1881_v58  ;;  %v1818_v47 = vadd.f32 %v1817_v11, %v1769_v48 }
 0x29f   : > { %1996 = vmatmul.bf16.gmra.mxu0 %v1892_v38 }
 0x2a0   : > { %v1861_v30 = vpop.f32.mrf.mxu3 }
 0x2a1   : > { %v1862_v41 = vadd.f32 %v1861_v30, %v1813_v35 }
 0x2a3   : > { %v1883_v17 = vmax.f32 %v1862_v41, 0.0 }
 0x2a4   : > { %v1819_v1 = vpop.f32.mrf.mxu2 }
 0x2a5   : > { %v1820_v4 = vadd.f32 %v1819_v1, %v1771_v28 }
 0x2a8   : > { %v1863_v42 = vpop.f32.mrf.mxu3 }
 0x2a9   : > { %v1864_v44 = vadd.f32 %v1863_v42, %v1815_v39 }
 0x2ab   : > { %v1884_v45 = vmax.f32 %v1864_v44, 0.0 }
 0x2ad   : > { %v1893_v29 = vpack.c.bf16 %v1884_v45, %v1883_v17 }
 0x2af   : > { %2001 = vmatmul.bf16.gmra.mxu0 %v1893_v29 }
 0x2b0   : > { %v1866_v12 = vpop.f32.mrf.mxu3 }
 0x2b1   : > { %v1867_v50 = vadd.f32 %v1866_v12, %v1818_v47 }
 0x2b3   : > { %v1885_v2 = vmax.f32 %v1867_v50, 0.0 }
 0x2b8   : > { %v1868_v51 = vpop.f32.mrf.mxu3 }
 0x2b9   : > { %v1869_v55 = vadd.f32 %v1868_v51, %v1820_v4  ;;  %v3097_v4 = vld [vmem:[%s3914_s8] ss:$0 sm:$0xff] }
 0x2bb   : > { %v1886_v62 = vmax.f32 %v1869_v55, 0.0 }
 0x2bd   : > { %v1894_v63 = vpack.c.bf16 %v1886_v62, %v1885_v2 }
 0x2bf   : > { %2006 = vmatmul.bf16.gmra.mxu0 %v1894_v63 }
 0x2cc   : > { %v1972_v14 = vpop.f32.mrf.mxu0 }
 0x2cd   : > { %v1973_v53 = vadd.f32 %v3096_v3, %v1972_v14 }
 0x2cf   : > { %v2012_v49 = vmax.f32 %v1973_v53, 0.0 }
 0x2d4   : > { %v1974_v5 = vpop.f32.mrf.mxu0 }
 0x2d5   : > { %v1975_v23 = vadd.f32 %v3096_v3, %v1974_v5 }
 0x2d7   : > { %v2013_v59 = vmax.f32 %v1975_v23, 0.0 }
 0x2d9   : > { %v2028_v0 = vpack.c.bf16 %v2013_v59, %v2012_v49 }
 0x2db   : > { %2112 = vmatmul.bf16.vlgmr.msrb.gmra.mxu1 %v2028_v0 }
 0x2dc   : > { %v1977_v54 = vpop.f32.mrf.mxu0 }
 0x2dd   : > { %v1978_v6 = vadd.f32 %v3096_v3, %v1977_v54 }
 0x2df   : > { %v2014_v52 = vmax.f32 %v1978_v6, 0.0 }
 0x2e4   : > { %v1979_v56 = vpop.f32.mrf.mxu0 }
 0x2e5   : > { %v1980_v22 = vadd.f32 %v3096_v3, %v1979_v56 }
 0x2e7   : > { %v2015_v57 = vmax.f32 %v1980_v22, 0.0 }
 0x2e9   : > { %v2029_v9 = vpack.c.bf16 %v2015_v57, %v2014_v52 }
 0x2eb   : > { %2117 = vmatmul.bf16.gmra.mxu1 %v2029_v9 }
 0x2ec   : > { %v1982_v36 = vpop.f32.mrf.mxu0 }
 0x2ed   : > { %v1983_v7 = vadd.f32 %v3096_v3, %v1982_v36 }
 0x2ef   : > { %v2016_v16 = vmax.f32 %v1983_v7, 0.0 }
 0x2f4   : > { %v1984_v40 = vpop.f32.mrf.mxu0 }
 0x2f5   : > { %v1985_v15 = vadd.f32 %v3096_v3, %v1984_v40 }
 0x2f7   : > { %v2017_v19 = vmax.f32 %v1985_v15, 0.0 }
 0x2f9   : > { %v2030_v20 = vpack.c.bf16 %v2017_v19, %v2016_v16 }
 0x2fb   : > { %2122 = vmatmul.bf16.gmra.mxu1 %v2030_v20 }
 0x2fc   : > { %v1987_v21 = vpop.f32.mrf.mxu0 }
 0x2fd   : > { %v1988_v37 = vadd.f32 %v3096_v3, %v1987_v21 }
 0x2ff   : > { %v2018_v8 = vmax.f32 %v1988_v37, 0.0 }
 0x304   : > { %v1989_v58 = vpop.f32.mrf.mxu0 }
 0x305   : > { %v1990_v25 = vadd.f32 %v3096_v3, %v1989_v58 }
 0x307   : > { %v2019_v38 = vmax.f32 %v1990_v25, 0.0 }
 0x309   : > { %v2031_v24 = vpack.c.bf16 %v2019_v38, %v2018_v8 }
 0x30b   : > { %2127 = vmatmul.bf16.gmra.mxu1 %v2031_v24 }
 0x30c   : > { %v1992_v26 = vpop.f32.mrf.mxu0 }
 0x30d   : > { %v1993_v27 = vadd.f32 %v3096_v3, %v1992_v26 }
 0x30f   : > { %v2020_v31 = vmax.f32 %v1993_v27, 0.0 }
 0x314   : > { %v1994_v18 = vpop.f32.mrf.mxu0 }
 0x315   : > { %v1995_v30 = vadd.f32 %v3096_v3, %v1994_v18 }
 0x317   : > { %v2021_v10 = vmax.f32 %v1995_v30, 0.0 }
 0x319   : > { %v2032_v33 = vpack.c.bf16 %v2021_v10, %v2020_v31 }
 0x31b   : > { %2132 = vmatmul.bf16.gmra.mxu1 %v2032_v33 }
 0x31c   : > { %v1997_v34 = vpop.f32.mrf.mxu0 }
 0x31d   : > { %v1998_v35 = vadd.f32 %v3096_v3, %v1997_v34 }
 0x31f   : > { %v2022_v41 = vmax.f32 %v1998_v35, 0.0 }
 0x324   : > { %v1999_v13 = vpop.f32.mrf.mxu0 }
 0x325   : > { %v2000_v39 = vadd.f32 %v3096_v3, %v1999_v13 }
 0x327   : > { %v2023_v61 = vmax.f32 %v2000_v39, 0.0 }
 0x329   : > { %v2033_v42 = vpack.c.bf16 %v2023_v61, %v2022_v41 }
 0x32b   : > { %2137 = vmatmul.bf16.gmra.mxu1 %v2033_v42 }
 0x32c   : > { %v2002_v44 = vpop.f32.mrf.mxu0 }
 0x32d   : > { %v2003_v11 = vadd.f32 %v3096_v3, %v2002_v44 }
 0x32f   : > { %v2024_v29 = vmax.f32 %v2003_v11, 0.0 }
 0x334   : > { %v2004_v17 = vpop.f32.mrf.mxu0 }
 0x335   : > { %v2005_v45 = vadd.f32 %v3096_v3, %v2004_v17 }
 0x337   : > { %v2025_v60 = vmax.f32 %v2005_v45, 0.0 }
 0x339   : > { %v2034_v12 = vpack.c.bf16 %v2025_v60, %v2024_v29 }
 0x33b   : > { %2142 = vmatmul.bf16.gmra.mxu1 %v2034_v12 }
 0x33c   : > { %v2007_v46 = vpop.f32.mrf.mxu0 }
 0x33d   : > { %v2008_v32 = vadd.f32 %v3096_v3, %v2007_v46 }
 0x33f   : > { %v2026_v1 = vmax.f32 %v2008_v32, 0.0 }
 0x344   : > { %v2009_v43 = vpop.f32.mrf.mxu0 }
 0x345   : > { %v2010_v48 = vadd.f32 %v3096_v3, %v2009_v43 }
 0x347   : > { %v2027_v28 = vmax.f32 %v2010_v48, 0.0 }
 0x349   : > { %v2035_v47 = vpack.c.bf16 %v2027_v28, %v2026_v1 }
 0x34b   : > { %2147 = vmatmul.bf16.gmra.mxu1 %v2035_v47 }
 0x358   : > { %v2113_v50 = vpop.f32.mrf.mxu1 }
 0x359   : > { %v2114_v51 = vadd.f32 %v3097_v4, %v2113_v50 }
 0x35b   : > { %2153 = vst [vmem:[%s3854_s22] sm:$0xff] %v2114_v51 }
 0x360   : > { %v2115_v55 = vpop.f32.mrf.mxu1 }
 0x361   : > { %v2116_v2 = vadd.f32 %v3097_v4, %v2115_v55 }
 0x363   : > { %2154 = vst [vmem:[%s3854_s22 + $0x8] sm:$0xff] %v2116_v2 }
 0x368   : > { %v2118_v62 = vpop.f32.mrf.mxu1 }
 0x369   : > { %v2119_v63 = vadd.f32 %v3097_v4, %v2118_v62 }
 0x36b   : > { %2155 = vst [vmem:[%s3854_s22 + $0x10] sm:$0xff] %v2119_v63 }
 0x370   : > { %v2120_v14 = vpop.f32.mrf.mxu1 }
 0x371   : > { %v2121_v3 = vadd.f32 %v3097_v4, %v2120_v14 }
 0x373   : > { %2156 = vst [vmem:[%s3854_s22 + $0x18] sm:$0xff] %v2121_v3 }
 0x378   : > { %v2123_v53 = vpop.f32.mrf.mxu1 }
 0x379   : > { %v2124_v5 = vadd.f32 %v3097_v4, %v2123_v53 }
 0x37b   : > { %2157 = vst [vmem:[%s3854_s22 + $0x20] sm:$0xff] %v2124_v5 }
 0x380   : > { %v2125_v23 = vpop.f32.mrf.mxu1 }
 0x381   : > { %v2126_v49 = vadd.f32 %v3097_v4, %v2125_v23 }
 0x383   : > { %2158 = vst [vmem:[%s3854_s22 + $0x28] sm:$0xff] %v2126_v49 }
 0x388   : > { %v2128_v59 = vpop.f32.mrf.mxu1 }
 0x389   : > { %v2129_v0 = vadd.f32 %v3097_v4, %v2128_v59 }
 0x38b   : > { %2159 = vst [vmem:[%s3854_s22 + $0x30] sm:$0xff] %v2129_v0 }
 0x390   : > { %v2130_v54 = vpop.f32.mrf.mxu1 }
 0x391   : > { %v2131_v6 = vadd.f32 %v3097_v4, %v2130_v54 }
 0x393   : > { %2160 = vst [vmem:[%s3854_s22 + $0x38] sm:$0xff] %v2131_v6 }
 0x398   : > { %v2133_v56 = vpop.f32.mrf.mxu1 }
 0x399   : > { %v2134_v22 = vadd.f32 %v3097_v4, %v2133_v56 }
 0x39b   : > { %2161 = vst [vmem:[%s3854_s22 + $0x40] sm:$0xff] %v2134_v22 }
 0x3a0   : > { %v2135_v52 = vpop.f32.mrf.mxu1 }
 0x3a1   : > { %v2136_v57 = vadd.f32 %v3097_v4, %v2135_v52 }
 0x3a3   : > { %2162 = vst [vmem:[%s3854_s22 + $0x48] sm:$0xff] %v2136_v57 }
 0x3a8   : > { %v2138_v9 = vpop.f32.mrf.mxu1 }
 0x3a9   : > { %v2139_v36 = vadd.f32 %v3097_v4, %v2138_v9 }
 0x3ab   : > { %2163 = vst [vmem:[%s3854_s22 + $0x50] sm:$0xff] %v2139_v36 }
 0x3b0   : > { %v2140_v7 = vpop.f32.mrf.mxu1 }
 0x3b1   : > { %v2141_v40 = vadd.f32 %v3097_v4, %v2140_v7 }
 0x3b3   : > { %2164 = vst [vmem:[%s3854_s22 + $0x58] sm:$0xff] %v2141_v40 }
 0x3b8   : > { %v2143_v15 = vpop.f32.mrf.mxu1 }
 0x3b9   : > { %v2144_v16 = vadd.f32 %v3097_v4, %v2143_v15 }
 0x3bb   : > { %2165 = vst [vmem:[%s3854_s22 + $0x60] sm:$0xff] %v2144_v16 }
 0x3c0   : > { %v2145_v19 = vpop.f32.mrf.mxu1 }
 0x3c1   : > { %v2146_v20 = vadd.f32 %v3097_v4, %v2145_v19 }
 0x3c3   : > { %2166 = vst [vmem:[%s3854_s22 + $0x68] sm:$0xff] %v2146_v20 }
 0x3c8   : > { %v2148_v21 = vpop.f32.mrf.mxu1 }
 0x3c9   : > { %v2149_v37 = vadd.f32 %v3097_v4, %v2148_v21 }
 0x3cb   : > { %2167 = vst [vmem:[%s3854_s22 + $0x70] sm:$0xff] %v2149_v37 }
 0x3d0   : > { %v2150_v58 = vpop.f32.mrf.mxu1 }
 0x3d1   : > { %v2151_v25 = vadd.f32 %v3097_v4, %v2150_v58 }
 0x3d3   : > { %2168 = vst [vmem:[%s3854_s22 + $0x78] sm:$0xff] %v2151_v25 }
 0x3d4   : > { %3305 = shalt.err (!%p3302_p9)
}
 0x3d5   : > { %s3369_s20 = smov 128   ;;  %s3370_s14 = smov 8  }
 0x3d6   : > { %3012 = dma.vmem_to_hbm [thread:$0]  (%p3511_p0), %s2183_s1, 2048, %s2185_s3, %s2170_s5, %s3369_s20, %s3369_s20, %s3370_s14  }
 0x3d7 PF: > { %s2199_s22 = sand.u32 1, %s3344_s30   ;;  %p3931_p10 = scmp.ge.s32.totalorder %s3356_s12, 2 }
 0x3d8   : > { %s2200_s26 = scalar_lea.sflag [#allocation4], %s2199_s22 }
 0x3d9   : > { %p3035_p11 = pnand %p3931_p10, %p3517_p6 }
 0x3db   : > { %p3036_p12 = pneg %p3035_p11 }
 0x3dd   : > { %3339 = dma.done.wait (%p3036_p12), %s2200_s26, 2048  }
 0x3de   : > { %3341 = vsyncadd (%p3036_p12), %s2200_s26, 4294965248  ;;  %p25_p2 = scmp.ge.s32.totalorder %s3487_s18, 4   ;;  %s3932_s30 = smov %s3348_s10 }
 0x3df   : > { %s3933_s10 = smov %s3352_s11  ;;  %s3934_s11 = smov %s3499_s24 }
 0x3e0   : > { %s3935_s12 = smov %s3487_s18  ;;  %27 = sbr.rel (!%p25_p2) target bundleno = 13 (0xd), region = 121 }
 0x3e5   :  { %2206 = vsyncpa [#allocation3], 1 }
 0x3e6   :  { %2208 = vsyncpa [#allocation3 + $0x1], 1 }
 0x3e7   :  { %2209 = vsyncpa [#allocation6], 1 }
 0x3e8   :  { %2210 = vsyncpa [#allocation9], 1 }
 0x3e9   :  { %2211 = vsyncpa [#allocation12], 1 }
 0x3ea   :  { %2212 = vsyncpa [#allocation4], 1 }
 0x3eb   :  { %2214 = vsyncpa [#allocation4 + $0x1], 1 }

</bundles_post_ra>
